<compile_context>
chip_gen: v7x
topology: tpu7x:2x2x1
jax: 0.10.0
libtpu: 0.0.40
codegen_flags: <defaults>
</compile_context>

<pallas_src>
import functools
import math

import jax
import jax.numpy as jnp
from jax.experimental import pallas as pl
from jax.experimental.pallas import tpu as pltpu

NEG_INF = -1e9
LN_EPS = 1e-5
LANES = 128

# slab row indices
_BQ, _BK, _BV, _BO, _G1, _BE1, _BF1, _BF2, _G2, _BE2 = range(10)


def _encoder_stack_kernel(n_layers, n_heads, batch, seq, d_model, d_ff,
                          x_ref, mask_ref,
                          wqkv_ref, wo_ref, w1_ref, w2_ref, slab_ref,
                          o_ref):
    L, H, B, S, D, F = n_layers, n_heads, batch, seq, d_model, d_ff
    N = B * S
    dh = D // H
    C = LANES // D                 # original rows packed per lane-dense row
    R = x_ref.shape[0]             # N * D // LANES

    # --- unpack lane-dense input -> [N, D] (sublane concat of lane chunks) ---
    xin = x_ref[...]                                              # [R, 128]
    x = jnp.concatenate([xin[:, c * D:(c + 1) * D] for c in range(C)], axis=0)

    mask = mask_ref[...]                                          # [B, S, S]

    def vec(l, idx, width):        # tiny per-layer vector from the packed slab
        return slab_ref[l, idx][:, :width]                        # [1, width]

    for l in range(L):             # fused layers; weights + activations in VMEM
        # ---- Q/K/V projections: three aligned dots (scale folded into Q) ----
        q = jnp.dot(x, wqkv_ref[l, 0], preferred_element_type=jnp.float32) + vec(l, _BQ, D)
        k = jnp.dot(x, wqkv_ref[l, 1], preferred_element_type=jnp.float32) + vec(l, _BK, D)
        v = jnp.dot(x, wqkv_ref[l, 2], preferred_element_type=jnp.float32) + vec(l, _BV, D)

        q3 = q.reshape(B, S, D)    # leading-dim split only (last dim unchanged)
        k3 = k.reshape(B, S, D)
        v3 = v.reshape(B, S, D)

        # ---- per-head attention, no transposes; heads merged by lane concat --
        ctx_heads = []
        for h in range(H):
            lo, hi = h * dh, (h + 1) * dh
            qh = q3[:, :, lo:hi]
            kh = k3[:, :, lo:hi]
            vh = v3[:, :, lo:hi]
            s = jnp.einsum('bqd,bkd->bqk', qh, kh,
                           preferred_element_type=jnp.float32)
            s = s + mask
            s = s - jnp.max(s, axis=-1, keepdims=True)
            p = jnp.exp(s)
            p = p * pl.reciprocal(jnp.sum(p, axis=-1, keepdims=True), approx=True)
            ctx_heads.append(jnp.einsum('bqk,bkd->bqd', p, vh,
                                        preferred_element_type=jnp.float32))
        ctx = jnp.concatenate(ctx_heads, axis=-1).reshape(N, D)   # head-major

        attn = jnp.dot(ctx, wo_ref[l],
                       preferred_element_type=jnp.float32) + vec(l, _BO, D)
        # dropout omitted (eval mode)

        # ---- add & norm 1 ----------------------------------------------------
        h1 = x + attn
        mu = jnp.mean(h1, axis=-1, keepdims=True)
        var = jnp.mean((h1 - mu) ** 2, axis=-1, keepdims=True)
        h1 = (h1 - mu) * jax.lax.rsqrt(var + LN_EPS) * vec(l, _G1, D) + vec(l, _BE1, D)

        # ---- position-wise feed-forward --------------------------------------
        ff = jnp.dot(h1, w1_ref[l], preferred_element_type=jnp.float32) + vec(l, _BF1, F)
        ff = jnp.maximum(ff, 0.0)
        ff = jnp.dot(ff, w2_ref[l], preferred_element_type=jnp.float32) + vec(l, _BF2, D)
        # dropout omitted (eval mode)

        # ---- add & norm 2 -----------------------------------------------------
        h2 = h1 + ff
        mu2 = jnp.mean(h2, axis=-1, keepdims=True)
        var2 = jnp.mean((h2 - mu2) ** 2, axis=-1, keepdims=True)
        x = (h2 - mu2) * jax.lax.rsqrt(var2 + LN_EPS) * vec(l, _G2, D) + vec(l, _BE2, D)

    # --- pack lane-dense output (unmasked full-lane stores) -------------------
    o_ref[...] = jnp.concatenate(
        [x[c * R:(c + 1) * R, :] for c in range(C)], axis=-1)


def _to_lane_dense(a2d):
    """[N, D] -> [N*D//128, 128], row n maps to chunk (n // R) of row (n % R)."""
    N, D = a2d.shape
    C = LANES // D
    R = N // C
    return a2d.reshape(C, R, D).transpose(1, 0, 2).reshape(R, LANES)


def _from_lane_dense(a2d, N, D):
    C = LANES // D
    R = N // C
    return a2d.reshape(R, C, D).transpose(1, 0, 2).reshape(N, D)


def encoder_stack(x, mask, packed_params, n_heads):
    """Entire SequentialEncoder (all layers) as ONE pallas_call, one grid step."""
    B, S, D = x.shape
    wqkv, wo, w1, w2, slab = packed_params
    L = wqkv.shape[0]
    F = w1.shape[-1]
    N = B * S
    H = n_heads
    dh = D // H
    assert D % H == 0 and LANES % D == 0 and N % (LANES // D) == 0
    assert D <= LANES and F <= LANES
    R = N * D // LANES

    def full(shape):
        zeros = (0,) * len(shape)
        return pl.BlockSpec(shape, lambda i, _z=zeros: _z)

    # advisory cost estimate for XLA scheduling around the custom call
    flops_per_layer = (3 * 2 * N * D * D            # q/k/v projections
                       + 2 * 2 * B * H * S * S * dh  # scores + context
                       + 2 * N * D * D               # output projection
                       + 2 * 2 * N * D * F)          # feed-forward
    transcendentals = L * (B * H * S * S + B * H * S + 2 * N)
    weight_arrays = (wqkv, wo, w1, w2, slab)
    bytes_accessed = (sum(int(a.size) * a.dtype.itemsize for a in weight_arrays)
                      + int(x.size) * 4 + int(mask.size) * 4 + N * D * 4)
    cost = pl.CostEstimate(flops=int(L * flops_per_layer),
                           transcendentals=int(transcendentals),
                           bytes_accessed=int(bytes_accessed))

    kernel = functools.partial(_encoder_stack_kernel, L, H, B, S, D, F)
    out = pl.pallas_call(
        kernel,
        out_shape=jax.ShapeDtypeStruct((R, LANES), jnp.float32),
        grid_spec=pltpu.PrefetchScalarGridSpec(
            num_scalar_prefetch=0,
            grid=(1,),
            in_specs=[
                full((R, LANES)),             # x, lane-dense
                full((B, S, S)),              # additive attention mask
                full((L, 3, D, D)),           # stacked wq/wk/wv (scale folded into wq)
                full((L, D, D)),              # wo
                full((L, D, F)),              # ffn w1
                full((L, F, D)),              # ffn w2
                full((L, 10, 1, LANES)),      # packed biases / LN gamma,beta
            ],
            out_specs=full((R, LANES)),
        ),
        compiler_params=pltpu.CompilerParams(
            dimension_semantics=("arbitrary",)),
        cost_estimate=cost,
    )(_to_lane_dense(x.reshape(N, D)), mask, wqkv, wo, w1, w2, slab)
    return _from_lane_dense(out, N, D).reshape(B, S, D)


def positional_encoding(max_len, d_model):
    pos = jnp.arange(max_len, dtype=jnp.float32)[:, None]
    i = jnp.arange(0, d_model, 2, dtype=jnp.float32)
    denom = jnp.power(10000.0, i / d_model)
    pe_even = jnp.sin(pos / denom)
    pe_odd = jnp.cos(pos / denom)
    return jnp.stack([pe_even, pe_odd], axis=-1).reshape(max_len, d_model)


if __name__ == "__main__":
    # small hyperparameters implied by the module constructor
    model_dim, hidden_fc, n_heads, n_layers = 32, 64, 4, 2
    drop_out_prob = 0.1          # unused at inference
    max_sequence_len = 8
    input_shape = None           # unused by the forward hot path
    dh = model_dim // n_heads
    scale = 1.0 / math.sqrt(dh)

    # language2idx + special tokens (SentenceEmbedding analogue)
    START_TOKEN, END_TOKEN, PADDING_TOKEN = "<START>", "<END>", "<PAD>"
    chars = list("abcdefghijklmnop")
    language2idx = {c: i for i, c in enumerate(chars)}
    language2idx[START_TOKEN] = len(language2idx)
    language2idx[END_TOKEN] = len(language2idx)
    language2idx[PADDING_TOKEN] = len(language2idx)
    vocab_size = len(language2idx)

    sentences = ["abcde", "fgh"]
    start_token, end_token = True, True
    B = len(sentences)

    def tokenize(sentence):
        ids = [language2idx[c] for c in sentence]
        if start_token:
            ids = [language2idx[START_TOKEN]] + ids
        if end_token:
            ids = ids + [language2idx[END_TOKEN]]
        ids = ids + [language2idx[PADDING_TOKEN]] * (max_sequence_len - len(ids))
        return ids[:max_sequence_len]

    token_ids = jnp.array([tokenize(s) for s in sentences], dtype=jnp.int32)  # [B, S]
    pad = token_ids == language2idx[PADDING_TOKEN]                            # [B, S]
    self_attention_mask = (pad[:, :, None] | pad[:, None, :]).astype(jnp.float32) * NEG_INF

    # deterministic parameter init
    key = jax.random.PRNGKey(0)
    k_emb, *k_layers = jax.random.split(key, n_layers + 1)
    emb_table = jax.random.normal(k_emb, (vocab_size, model_dim), jnp.float32) * 0.02

    # torch fused-qkv column layout is per-head interleaved [q|k|v] blocks of dh
    # (qkv.reshape(B,S,H,3*dh).chunk(3,-1)); extract per-kind head-major [D,D]
    # weights so heads stay lane-contiguous and no in-kernel slicing is needed.
    def kind_cols(kind):
        return jnp.array([h * 3 * dh + kind * dh + d
                          for h in range(n_heads) for d in range(dh)], jnp.int32)

    q_cols, k_cols, v_cols = kind_cols(0), kind_cols(1), kind_cols(2)

    def pad128(v):
        return jnp.pad(v, (0, LANES - v.shape[0]))

    def init_layer(k):
        ks = jax.random.split(k, 4)
        D, F = model_dim, hidden_fc
        wqkv_t = jax.random.normal(ks[0], (D, 3 * D), jnp.float32) / math.sqrt(D)  # torch layout
        bqkv_t = jnp.zeros((3 * D,), jnp.float32)
        wo = jax.random.normal(ks[1], (D, D), jnp.float32) / math.sqrt(D)
        bo = jnp.zeros((D,), jnp.float32)
        g1, be1 = jnp.ones((D,), jnp.float32), jnp.zeros((D,), jnp.float32)
        w1 = jax.random.normal(ks[2], (D, F), jnp.float32) / math.sqrt(D)
        bf1 = jnp.zeros((F,), jnp.float32)
        w2 = jax.random.normal(ks[3], (F, D), jnp.float32) / math.sqrt(F)
        bf2 = jnp.zeros((D,), jnp.float32)
        g2, be2 = jnp.ones((D,), jnp.float32), jnp.zeros((D,), jnp.float32)

        # host-side constant transforms: head-major Q/K/V + 1/sqrt(dh) fold into Q
        wq = wqkv_t[:, q_cols] * scale
        bq = bqkv_t[q_cols] * scale
        wk, bk = wqkv_t[:, k_cols], bqkv_t[k_cols]
        wv, bv = wqkv_t[:, v_cols], bqkv_t[v_cols]

        wqkv = jnp.stack([wq, wk, wv], axis=0)                       # [3, D, D]
        slab = jnp.stack([pad128(bq), pad128(bk), pad128(bv), pad128(bo),
                          pad128(g1), pad128(be1), pad128(bf1), pad128(bf2),
                          pad128(g2), pad128(be2)], axis=0)[:, None, :]  # [10,1,128]
        return wqkv, wo, w1, w2, slab

    layer_params = [init_layer(k) for k in k_layers]
    packed_params = tuple(jnp.stack(p, axis=0) for p in zip(*layer_params))

    # SentenceEmbedding: token embedding gather + sinusoidal PE (glue, plain JAX)
    # TODO(synk): dropout inside SentenceEmbedding/EncoderLayer is identity (eval mode)
    pe = positional_encoding(max_sequence_len, model_dim)
    x = emb_table[token_ids] + pe[None, :, :]

    # SequentialEncoder: all encoder layers fused in ONE Pallas kernel call
    x = encoder_stack(x, self_attention_mask, packed_params, n_heads)

    x = jax.block_until_ready(x)
    assert x.shape == (B, max_sequence_len, model_dim)
    assert bool(jnp.all(jnp.isfinite(x)))
    print("KERNEL_OK")
</pallas_src>

<mosaic_0001>
module attributes {stable_mosaic.version = 11 : i64} {
  func.func @_encoder_stack_kernel(%arg0: i32, %arg1: memref<4x128xf32, #tpu.memory_space<vmem>>, %arg2: memref<2x8x8xf32, #tpu.memory_space<vmem>>, %arg3: memref<2x3x32x32xf32, #tpu.memory_space<vmem>>, %arg4: memref<2x32x32xf32, #tpu.memory_space<vmem>>, %arg5: memref<2x32x64xf32, #tpu.memory_space<vmem>>, %arg6: memref<2x64x32xf32, #tpu.memory_space<vmem>>, %arg7: memref<2x10x1x128xf32, #tpu.memory_space<vmem>>, %arg8: memref<4x128xf32, #tpu.memory_space<vmem>>) attributes {dimension_semantics = [#tpu.dimension_semantics<arbitrary>], iteration_bounds = array<i64: 1>, scalar_prefetch = 0 : i64, scratch_operands = 0 : i64, tpu.core_type = #tpu.core_type<tc>, window_params = [{pipeline_mode = #tpu.pipeline_mode<synchronous>, transform_indices = @transform_0, window_bounds = array<i64: 4, 128>}, {pipeline_mode = #tpu.pipeline_mode<synchronous>, transform_indices = @transform_1, window_bounds = array<i64: 2, 8, 8>}, {pipeline_mode = #tpu.pipeline_mode<synchronous>, transform_indices = @transform_2, window_bounds = array<i64: 2, 3, 32, 32>}, {pipeline_mode = #tpu.pipeline_mode<synchronous>, transform_indices = @transform_3, window_bounds = array<i64: 2, 32, 32>}, {pipeline_mode = #tpu.pipeline_mode<synchronous>, transform_indices = @transform_4, window_bounds = array<i64: 2, 32, 64>}, {pipeline_mode = #tpu.pipeline_mode<synchronous>, transform_indices = @transform_5, window_bounds = array<i64: 2, 64, 32>}, {pipeline_mode = #tpu.pipeline_mode<synchronous>, transform_indices = @transform_6, window_bounds = array<i64: 2, 10, 1, 128>}, {pipeline_mode = #tpu.pipeline_mode<synchronous>, transform_indices = @transform_7, window_bounds = array<i64: 4, 128>}]} {
    %c0 = arith.constant 0 : index
    %c0_0 = arith.constant 0 : index
    %0 = vector.load %arg1[%c0, %c0_0] : memref<4x128xf32, #tpu.memory_space<vmem>>, vector<4x128xf32>
    %1 = vector.extract_strided_slice %0 {offsets = [0, 0], sizes = [4, 32], strides = [1, 1]} : vector<4x128xf32> to vector<4x32xf32>
    %2 = vector.extract_strided_slice %0 {offsets = [0, 32], sizes = [4, 32], strides = [1, 1]} : vector<4x128xf32> to vector<4x32xf32>
    %3 = vector.extract_strided_slice %0 {offsets = [0, 64], sizes = [4, 32], strides = [1, 1]} : vector<4x128xf32> to vector<4x32xf32>
    %4 = vector.extract_strided_slice %0 {offsets = [0, 96], sizes = [4, 32], strides = [1, 1]} : vector<4x128xf32> to vector<4x32xf32>
    %5 = tpu.concatenate %1, %2, %3, %4 in 0 : vector<4x32xf32>, vector<4x32xf32>, vector<4x32xf32>, vector<4x32xf32> -> vector<16x32xf32>
    %c0_1 = arith.constant 0 : index
    %c0_2 = arith.constant 0 : index
    %c0_3 = arith.constant 0 : index
    %6 = vector.load %arg2[%c0_1, %c0_2, %c0_3] : memref<2x8x8xf32, #tpu.memory_space<vmem>>, vector<2x8x8xf32>
    %c0_4 = arith.constant 0 : index
    %c0_5 = arith.constant 0 : index
    %c0_6 = arith.constant 0 : index
    %c0_7 = arith.constant 0 : index
    %7 = vector.load %arg3[%c0_4, %c0_5, %c0_6, %c0_7] : memref<2x3x32x32xf32, #tpu.memory_space<vmem>>, vector<1x1x32x32xf32>
    %8 = vector.shape_cast %7 : vector<1x1x32x32xf32> to vector<32x32xf32>
    %cst = arith.constant dense<0.000000e+00> : vector<16x32xf32>
    %9 = tpu.matmul %5, %8, %cst {dimension_numbers = #tpu.dot_dimension_numbers<[1], [0], [0], [1], [0, 0, 1, 1], [], []>} : vector<16x32xf32>, vector<32x32xf32>, vector<16x32xf32> -> vector<16x32xf32>
    %c0_8 = arith.constant 0 : index
    %c0_9 = arith.constant 0 : index
    %c0_10 = arith.constant 0 : index
    %c0_11 = arith.constant 0 : index
    %10 = vector.load %arg7[%c0_8, %c0_9, %c0_10, %c0_11] : memref<2x10x1x128xf32, #tpu.memory_space<vmem>>, vector<1x1x1x128xf32>
    %11 = vector.shape_cast %10 : vector<1x1x1x128xf32> to vector<1x128xf32>
    %12 = vector.extract_strided_slice %11 {offsets = [0, 0], sizes = [1, 32], strides = [1, 1]} : vector<1x128xf32> to vector<1x32xf32>
    %13 = vector.broadcast %12 : vector<1x32xf32> to vector<16x32xf32>
    %14 = arith.addf %9, %13 : vector<16x32xf32>
    %c0_12 = arith.constant 0 : index
    %c1 = arith.constant 1 : index
    %c0_13 = arith.constant 0 : index
    %c0_14 = arith.constant 0 : index
    %15 = vector.load %arg3[%c0_12, %c1, %c0_13, %c0_14] : memref<2x3x32x32xf32, #tpu.memory_space<vmem>>, vector<1x1x32x32xf32>
    %16 = vector.shape_cast %15 : vector<1x1x32x32xf32> to vector<32x32xf32>
    %cst_15 = arith.constant dense<0.000000e+00> : vector<16x32xf32>
    %17 = tpu.matmul %5, %16, %cst_15 {dimension_numbers = #tpu.dot_dimension_numbers<[1], [0], [0], [1], [0, 0, 1, 1], [], []>} : vector<16x32xf32>, vector<32x32xf32>, vector<16x32xf32> -> vector<16x32xf32>
    %c0_16 = arith.constant 0 : index
    %c1_17 = arith.constant 1 : index
    %c0_18 = arith.constant 0 : index
    %c0_19 = arith.constant 0 : index
    %18 = vector.load %arg7[%c0_16, %c1_17, %c0_18, %c0_19] : memref<2x10x1x128xf32, #tpu.memory_space<vmem>>, vector<1x1x1x128xf32>
    %19 = vector.shape_cast %18 : vector<1x1x1x128xf32> to vector<1x128xf32>
    %20 = vector.extract_strided_slice %19 {offsets = [0, 0], sizes = [1, 32], strides = [1, 1]} : vector<1x128xf32> to vector<1x32xf32>
    %21 = vector.broadcast %20 : vector<1x32xf32> to vector<16x32xf32>
    %22 = arith.addf %17, %21 : vector<16x32xf32>
    %c0_20 = arith.constant 0 : index
    %c2 = arith.constant 2 : index
    %c0_21 = arith.constant 0 : index
    %c0_22 = arith.constant 0 : index
    %23 = vector.load %arg3[%c0_20, %c2, %c0_21, %c0_22] : memref<2x3x32x32xf32, #tpu.memory_space<vmem>>, vector<1x1x32x32xf32>
    %24 = vector.shape_cast %23 : vector<1x1x32x32xf32> to vector<32x32xf32>
    %cst_23 = arith.constant dense<0.000000e+00> : vector<16x32xf32>
    %25 = tpu.matmul %5, %24, %cst_23 {dimension_numbers = #tpu.dot_dimension_numbers<[1], [0], [0], [1], [0, 0, 1, 1], [], []>} : vector<16x32xf32>, vector<32x32xf32>, vector<16x32xf32> -> vector<16x32xf32>
    %c0_24 = arith.constant 0 : index
    %c2_25 = arith.constant 2 : index
    %c0_26 = arith.constant 0 : index
    %c0_27 = arith.constant 0 : index
    %26 = vector.load %arg7[%c0_24, %c2_25, %c0_26, %c0_27] : memref<2x10x1x128xf32, #tpu.memory_space<vmem>>, vector<1x1x1x128xf32>
    %27 = vector.shape_cast %26 : vector<1x1x1x128xf32> to vector<1x128xf32>
    %28 = vector.extract_strided_slice %27 {offsets = [0, 0], sizes = [1, 32], strides = [1, 1]} : vector<1x128xf32> to vector<1x32xf32>
    %29 = vector.broadcast %28 : vector<1x32xf32> to vector<16x32xf32>
    %30 = arith.addf %25, %29 : vector<16x32xf32>
    %31 = vector.shape_cast %14 : vector<16x32xf32> to vector<2x8x32xf32>
    %32 = vector.shape_cast %22 : vector<16x32xf32> to vector<2x8x32xf32>
    %33 = vector.shape_cast %30 : vector<16x32xf32> to vector<2x8x32xf32>
    %34 = vector.extract_strided_slice %31 {offsets = [0, 0, 0], sizes = [2, 8, 8], strides = [1, 1, 1]} : vector<2x8x32xf32> to vector<2x8x8xf32>
    %35 = vector.extract_strided_slice %32 {offsets = [0, 0, 0], sizes = [2, 8, 8], strides = [1, 1, 1]} : vector<2x8x32xf32> to vector<2x8x8xf32>
    %36 = vector.extract_strided_slice %33 {offsets = [0, 0, 0], sizes = [2, 8, 8], strides = [1, 1, 1]} : vector<2x8x32xf32> to vector<2x8x8xf32>
    "tpu.trace_start"() <{level = 10 : i32, message = "bqd,bkd->bqk"}> : () -> ()
    %cst_28 = arith.constant dense<0.000000e+00> : vector<2x8x8xf32>
    %37 = tpu.matmul %34, %35, %cst_28 {dimension_numbers = #tpu.dot_dimension_numbers<[2], [2], [1], [1], [0, 0, 0, 1, 1, 1], [0], [0]>} : vector<2x8x8xf32>, vector<2x8x8xf32>, vector<2x8x8xf32> -> vector<2x8x8xf32>
    "tpu.trace_stop"() : () -> ()
    %38 = arith.addf %37, %6 : vector<2x8x8xf32>
    %cst_29 = arith.constant dense<0xFF800000> : vector<2x8xf32>
    %39 = vector.multi_reduction <maximumf>, %38, %cst_29 [2] : vector<2x8x8xf32> to vector<2x8xf32>
    %40 = vector.shape_cast %39 : vector<2x8xf32> to vector<2x8x1xf32>
    %41 = vector.broadcast %40 : vector<2x8x1xf32> to vector<2x8x8xf32>
    %42 = arith.subf %38, %41 : vector<2x8x8xf32>
    %43 = math.exp %42 : vector<2x8x8xf32>
    %cst_30 = arith.constant dense<0.000000e+00> : vector<2x8xf32>
    %44 = vector.multi_reduction <add>, %43, %cst_30 [2] : vector<2x8x8xf32> to vector<2x8xf32>
    %45 = vector.shape_cast %44 : vector<2x8xf32> to vector<2x8x1xf32>
    %46 = tpu.reciprocal %45 {approx = true} : vector<2x8x1xf32> -> vector<2x8x1xf32>
    %47 = vector.broadcast %46 : vector<2x8x1xf32> to vector<2x8x8xf32>
    %48 = arith.mulf %43, %47 : vector<2x8x8xf32>
    "tpu.trace_start"() <{level = 10 : i32, message = "bqk,bkd->bqd"}> : () -> ()
    %cst_31 = arith.constant dense<0.000000e+00> : vector<2x8x8xf32>
    %49 = tpu.matmul %48, %36, %cst_31 {dimension_numbers = #tpu.dot_dimension_numbers<[2], [1], [1], [2], [0, 0, 0, 1, 1, 2], [0], [0]>} : vector<2x8x8xf32>, vector<2x8x8xf32>, vector<2x8x8xf32> -> vector<2x8x8xf32>
    "tpu.trace_stop"() : () -> ()
    %50 = vector.extract_strided_slice %31 {offsets = [0, 0, 8], sizes = [2, 8, 8], strides = [1, 1, 1]} : vector<2x8x32xf32> to vector<2x8x8xf32>
    %51 = vector.extract_strided_slice %32 {offsets = [0, 0, 8], sizes = [2, 8, 8], strides = [1, 1, 1]} : vector<2x8x32xf32> to vector<2x8x8xf32>
    %52 = vector.extract_strided_slice %33 {offsets = [0, 0, 8], sizes = [2, 8, 8], strides = [1, 1, 1]} : vector<2x8x32xf32> to vector<2x8x8xf32>
    "tpu.trace_start"() <{level = 10 : i32, message = "bqd,bkd->bqk"}> : () -> ()
    %cst_32 = arith.constant dense<0.000000e+00> : vector<2x8x8xf32>
    %53 = tpu.matmul %50, %51, %cst_32 {dimension_numbers = #tpu.dot_dimension_numbers<[2], [2], [1], [1], [0, 0, 0, 1, 1, 1], [0], [0]>} : vector<2x8x8xf32>, vector<2x8x8xf32>, vector<2x8x8xf32> -> vector<2x8x8xf32>
    "tpu.trace_stop"() : () -> ()
    %54 = arith.addf %53, %6 : vector<2x8x8xf32>
    %cst_33 = arith.constant dense<0xFF800000> : vector<2x8xf32>
    %55 = vector.multi_reduction <maximumf>, %54, %cst_33 [2] : vector<2x8x8xf32> to vector<2x8xf32>
    %56 = vector.shape_cast %55 : vector<2x8xf32> to vector<2x8x1xf32>
    %57 = vector.broadcast %56 : vector<2x8x1xf32> to vector<2x8x8xf32>
    %58 = arith.subf %54, %57 : vector<2x8x8xf32>
    %59 = math.exp %58 : vector<2x8x8xf32>
    %cst_34 = arith.constant dense<0.000000e+00> : vector<2x8xf32>
    %60 = vector.multi_reduction <add>, %59, %cst_34 [2] : vector<2x8x8xf32> to vector<2x8xf32>
    %61 = vector.shape_cast %60 : vector<2x8xf32> to vector<2x8x1xf32>
    %62 = tpu.reciprocal %61 {approx = true} : vector<2x8x1xf32> -> vector<2x8x1xf32>
    %63 = vector.broadcast %62 : vector<2x8x1xf32> to vector<2x8x8xf32>
    %64 = arith.mulf %59, %63 : vector<2x8x8xf32>
    "tpu.trace_start"() <{level = 10 : i32, message = "bqk,bkd->bqd"}> : () -> ()
    %cst_35 = arith.constant dense<0.000000e+00> : vector<2x8x8xf32>
    %65 = tpu.matmul %64, %52, %cst_35 {dimension_numbers = #tpu.dot_dimension_numbers<[2], [1], [1], [2], [0, 0, 0, 1, 1, 2], [0], [0]>} : vector<2x8x8xf32>, vector<2x8x8xf32>, vector<2x8x8xf32> -> vector<2x8x8xf32>
    "tpu.trace_stop"() : () -> ()
    %66 = vector.extract_strided_slice %31 {offsets = [0, 0, 16], sizes = [2, 8, 8], strides = [1, 1, 1]} : vector<2x8x32xf32> to vector<2x8x8xf32>
    %67 = vector.extract_strided_slice %32 {offsets = [0, 0, 16], sizes = [2, 8, 8], strides = [1, 1, 1]} : vector<2x8x32xf32> to vector<2x8x8xf32>
    %68 = vector.extract_strided_slice %33 {offsets = [0, 0, 16], sizes = [2, 8, 8], strides = [1, 1, 1]} : vector<2x8x32xf32> to vector<2x8x8xf32>
    "tpu.trace_start"() <{level = 10 : i32, message = "bqd,bkd->bqk"}> : () -> ()
    %cst_36 = arith.constant dense<0.000000e+00> : vector<2x8x8xf32>
    %69 = tpu.matmul %66, %67, %cst_36 {dimension_numbers = #tpu.dot_dimension_numbers<[2], [2], [1], [1], [0, 0, 0, 1, 1, 1], [0], [0]>} : vector<2x8x8xf32>, vector<2x8x8xf32>, vector<2x8x8xf32> -> vector<2x8x8xf32>
    "tpu.trace_stop"() : () -> ()
    %70 = arith.addf %69, %6 : vector<2x8x8xf32>
    %cst_37 = arith.constant dense<0xFF800000> : vector<2x8xf32>
    %71 = vector.multi_reduction <maximumf>, %70, %cst_37 [2] : vector<2x8x8xf32> to vector<2x8xf32>
    %72 = vector.shape_cast %71 : vector<2x8xf32> to vector<2x8x1xf32>
    %73 = vector.broadcast %72 : vector<2x8x1xf32> to vector<2x8x8xf32>
    %74 = arith.subf %70, %73 : vector<2x8x8xf32>
    %75 = math.exp %74 : vector<2x8x8xf32>
    %cst_38 = arith.constant dense<0.000000e+00> : vector<2x8xf32>
    %76 = vector.multi_reduction <add>, %75, %cst_38 [2] : vector<2x8x8xf32> to vector<2x8xf32>
    %77 = vector.shape_cast %76 : vector<2x8xf32> to vector<2x8x1xf32>
    %78 = tpu.reciprocal %77 {approx = true} : vector<2x8x1xf32> -> vector<2x8x1xf32>
    %79 = vector.broadcast %78 : vector<2x8x1xf32> to vector<2x8x8xf32>
    %80 = arith.mulf %75, %79 : vector<2x8x8xf32>
    "tpu.trace_start"() <{level = 10 : i32, message = "bqk,bkd->bqd"}> : () -> ()
    %cst_39 = arith.constant dense<0.000000e+00> : vector<2x8x8xf32>
    %81 = tpu.matmul %80, %68, %cst_39 {dimension_numbers = #tpu.dot_dimension_numbers<[2], [1], [1], [2], [0, 0, 0, 1, 1, 2], [0], [0]>} : vector<2x8x8xf32>, vector<2x8x8xf32>, vector<2x8x8xf32> -> vector<2x8x8xf32>
    "tpu.trace_stop"() : () -> ()
    %82 = vector.extract_strided_slice %31 {offsets = [0, 0, 24], sizes = [2, 8, 8], strides = [1, 1, 1]} : vector<2x8x32xf32> to vector<2x8x8xf32>
    %83 = vector.extract_strided_slice %32 {offsets = [0, 0, 24], sizes = [2, 8, 8], strides = [1, 1, 1]} : vector<2x8x32xf32> to vector<2x8x8xf32>
    %84 = vector.extract_strided_slice %33 {offsets = [0, 0, 24], sizes = [2, 8, 8], strides = [1, 1, 1]} : vector<2x8x32xf32> to vector<2x8x8xf32>
    "tpu.trace_start"() <{level = 10 : i32, message = "bqd,bkd->bqk"}> : () -> ()
    %cst_40 = arith.constant dense<0.000000e+00> : vector<2x8x8xf32>
    %85 = tpu.matmul %82, %83, %cst_40 {dimension_numbers = #tpu.dot_dimension_numbers<[2], [2], [1], [1], [0, 0, 0, 1, 1, 1], [0], [0]>} : vector<2x8x8xf32>, vector<2x8x8xf32>, vector<2x8x8xf32> -> vector<2x8x8xf32>
    "tpu.trace_stop"() : () -> ()
    %86 = arith.addf %85, %6 : vector<2x8x8xf32>
    %cst_41 = arith.constant dense<0xFF800000> : vector<2x8xf32>
    %87 = vector.multi_reduction <maximumf>, %86, %cst_41 [2] : vector<2x8x8xf32> to vector<2x8xf32>
    %88 = vector.shape_cast %87 : vector<2x8xf32> to vector<2x8x1xf32>
    %89 = vector.broadcast %88 : vector<2x8x1xf32> to vector<2x8x8xf32>
    %90 = arith.subf %86, %89 : vector<2x8x8xf32>
    %91 = math.exp %90 : vector<2x8x8xf32>
    %cst_42 = arith.constant dense<0.000000e+00> : vector<2x8xf32>
    %92 = vector.multi_reduction <add>, %91, %cst_42 [2] : vector<2x8x8xf32> to vector<2x8xf32>
    %93 = vector.shape_cast %92 : vector<2x8xf32> to vector<2x8x1xf32>
    %94 = tpu.reciprocal %93 {approx = true} : vector<2x8x1xf32> -> vector<2x8x1xf32>
    %95 = vector.broadcast %94 : vector<2x8x1xf32> to vector<2x8x8xf32>
    %96 = arith.mulf %91, %95 : vector<2x8x8xf32>
    "tpu.trace_start"() <{level = 10 : i32, message = "bqk,bkd->bqd"}> : () -> ()
    %cst_43 = arith.constant dense<0.000000e+00> : vector<2x8x8xf32>
    %97 = tpu.matmul %96, %84, %cst_43 {dimension_numbers = #tpu.dot_dimension_numbers<[2], [1], [1], [2], [0, 0, 0, 1, 1, 2], [0], [0]>} : vector<2x8x8xf32>, vector<2x8x8xf32>, vector<2x8x8xf32> -> vector<2x8x8xf32>
    "tpu.trace_stop"() : () -> ()
    %98 = tpu.concatenate %49, %65, %81, %97 in 2 : vector<2x8x8xf32>, vector<2x8x8xf32>, vector<2x8x8xf32>, vector<2x8x8xf32> -> vector<2x8x32xf32>
    %99 = vector.shape_cast %98 : vector<2x8x32xf32> to vector<16x32xf32>
    %c0_44 = arith.constant 0 : index
    %c0_45 = arith.constant 0 : index
    %c0_46 = arith.constant 0 : index
    %100 = vector.load %arg4[%c0_44, %c0_45, %c0_46] : memref<2x32x32xf32, #tpu.memory_space<vmem>>, vector<1x32x32xf32>
    %101 = vector.shape_cast %100 : vector<1x32x32xf32> to vector<32x32xf32>
    %cst_47 = arith.constant dense<0.000000e+00> : vector<16x32xf32>
    %102 = tpu.matmul %99, %101, %cst_47 {dimension_numbers = #tpu.dot_dimension_numbers<[1], [0], [0], [1], [0, 0, 1, 1], [], []>} : vector<16x32xf32>, vector<32x32xf32>, vector<16x32xf32> -> vector<16x32xf32>
    %c0_48 = arith.constant 0 : index
    %c3 = arith.constant 3 : index
    %c0_49 = arith.constant 0 : index
    %c0_50 = arith.constant 0 : index
    %103 = vector.load %arg7[%c0_48, %c3, %c0_49, %c0_50] : memref<2x10x1x128xf32, #tpu.memory_space<vmem>>, vector<1x1x1x128xf32>
    %104 = vector.shape_cast %103 : vector<1x1x1x128xf32> to vector<1x128xf32>
    %105 = vector.extract_strided_slice %104 {offsets = [0, 0], sizes = [1, 32], strides = [1, 1]} : vector<1x128xf32> to vector<1x32xf32>
    %106 = vector.broadcast %105 : vector<1x32xf32> to vector<16x32xf32>
    %107 = arith.addf %102, %106 : vector<16x32xf32>
    %108 = arith.addf %5, %107 : vector<16x32xf32>
    %cst_51 = arith.constant dense<0.000000e+00> : vector<16xf32>
    %109 = vector.multi_reduction <add>, %108, %cst_51 [1] : vector<16x32xf32> to vector<16xf32>
    %110 = vector.shape_cast %109 : vector<16xf32> to vector<16x1xf32>
    %cst_52 = arith.constant 3.200000e+01 : f32
    %111 = vector.broadcast %cst_52 : f32 to vector<16x1xf32>
    %112 = arith.divf %110, %111 : vector<16x1xf32>
    %113 = vector.broadcast %112 : vector<16x1xf32> to vector<16x32xf32>
    %114 = arith.subf %108, %113 : vector<16x32xf32>
    %115 = arith.mulf %114, %114 : vector<16x32xf32>
    %cst_53 = arith.constant dense<0.000000e+00> : vector<16xf32>
    %116 = vector.multi_reduction <add>, %115, %cst_53 [1] : vector<16x32xf32> to vector<16xf32>
    %117 = vector.shape_cast %116 : vector<16xf32> to vector<16x1xf32>
    %cst_54 = arith.constant 3.200000e+01 : f32
    %118 = vector.broadcast %cst_54 : f32 to vector<16x1xf32>
    %119 = arith.divf %117, %118 : vector<16x1xf32>
    %120 = vector.broadcast %112 : vector<16x1xf32> to vector<16x32xf32>
    %121 = arith.subf %108, %120 : vector<16x32xf32>
    %cst_55 = arith.constant 9.99999974E-6 : f32
    %122 = vector.broadcast %cst_55 : f32 to vector<16x1xf32>
    %123 = arith.addf %119, %122 : vector<16x1xf32>
    %124 = math.rsqrt %123 : vector<16x1xf32>
    %125 = vector.broadcast %124 : vector<16x1xf32> to vector<16x32xf32>
    %126 = arith.mulf %121, %125 : vector<16x32xf32>
    %c0_56 = arith.constant 0 : index
    %c4 = arith.constant 4 : index
    %c0_57 = arith.constant 0 : index
    %c0_58 = arith.constant 0 : index
    %127 = vector.load %arg7[%c0_56, %c4, %c0_57, %c0_58] : memref<2x10x1x128xf32, #tpu.memory_space<vmem>>, vector<1x1x1x128xf32>
    %128 = vector.shape_cast %127 : vector<1x1x1x128xf32> to vector<1x128xf32>
    %129 = vector.extract_strided_slice %128 {offsets = [0, 0], sizes = [1, 32], strides = [1, 1]} : vector<1x128xf32> to vector<1x32xf32>
    %130 = vector.broadcast %129 : vector<1x32xf32> to vector<16x32xf32>
    %131 = arith.mulf %126, %130 : vector<16x32xf32>
    %c0_59 = arith.constant 0 : index
    %c5 = arith.constant 5 : index
    %c0_60 = arith.constant 0 : index
    %c0_61 = arith.constant 0 : index
    %132 = vector.load %arg7[%c0_59, %c5, %c0_60, %c0_61] : memref<2x10x1x128xf32, #tpu.memory_space<vmem>>, vector<1x1x1x128xf32>
    %133 = vector.shape_cast %132 : vector<1x1x1x128xf32> to vector<1x128xf32>
    %134 = vector.extract_strided_slice %133 {offsets = [0, 0], sizes = [1, 32], strides = [1, 1]} : vector<1x128xf32> to vector<1x32xf32>
    %135 = vector.broadcast %134 : vector<1x32xf32> to vector<16x32xf32>
    %136 = arith.addf %131, %135 : vector<16x32xf32>
    %c0_62 = arith.constant 0 : index
    %c0_63 = arith.constant 0 : index
    %c0_64 = arith.constant 0 : index
    %137 = vector.load %arg5[%c0_62, %c0_63, %c0_64] : memref<2x32x64xf32, #tpu.memory_space<vmem>>, vector<1x32x64xf32>
    %138 = vector.shape_cast %137 : vector<1x32x64xf32> to vector<32x64xf32>
    %cst_65 = arith.constant dense<0.000000e+00> : vector<16x64xf32>
    %139 = tpu.matmul %136, %138, %cst_65 {dimension_numbers = #tpu.dot_dimension_numbers<[1], [0], [0], [1], [0, 0, 1, 1], [], []>} : vector<16x32xf32>, vector<32x64xf32>, vector<16x64xf32> -> vector<16x64xf32>
    %c0_66 = arith.constant 0 : index
    %c6 = arith.constant 6 : index
    %c0_67 = arith.constant 0 : index
    %c0_68 = arith.constant 0 : index
    %140 = vector.load %arg7[%c0_66, %c6, %c0_67, %c0_68] : memref<2x10x1x128xf32, #tpu.memory_space<vmem>>, vector<1x1x1x128xf32>
    %141 = vector.shape_cast %140 : vector<1x1x1x128xf32> to vector<1x128xf32>
    %142 = vector.extract_strided_slice %141 {offsets = [0, 0], sizes = [1, 64], strides = [1, 1]} : vector<1x128xf32> to vector<1x64xf32>
    %143 = vector.broadcast %142 : vector<1x64xf32> to vector<16x64xf32>
    %144 = arith.addf %139, %143 : vector<16x64xf32>
    %cst_69 = arith.constant 0.000000e+00 : f32
    %145 = vector.broadcast %cst_69 : f32 to vector<16x64xf32>
    %146 = arith.maximumf %144, %145 : vector<16x64xf32>
    %c0_70 = arith.constant 0 : index
    %c0_71 = arith.constant 0 : index
    %c0_72 = arith.constant 0 : index
    %147 = vector.load %arg6[%c0_70, %c0_71, %c0_72] : memref<2x64x32xf32, #tpu.memory_space<vmem>>, vector<1x64x32xf32>
    %148 = vector.shape_cast %147 : vector<1x64x32xf32> to vector<64x32xf32>
    %cst_73 = arith.constant dense<0.000000e+00> : vector<16x32xf32>
    %149 = tpu.matmul %146, %148, %cst_73 {dimension_numbers = #tpu.dot_dimension_numbers<[1], [0], [0], [1], [0, 0, 1, 1], [], []>} : vector<16x64xf32>, vector<64x32xf32>, vector<16x32xf32> -> vector<16x32xf32>
    %c0_74 = arith.constant 0 : index
    %c7 = arith.constant 7 : index
    %c0_75 = arith.constant 0 : index
    %c0_76 = arith.constant 0 : index
    %150 = vector.load %arg7[%c0_74, %c7, %c0_75, %c0_76] : memref<2x10x1x128xf32, #tpu.memory_space<vmem>>, vector<1x1x1x128xf32>
    %151 = vector.shape_cast %150 : vector<1x1x1x128xf32> to vector<1x128xf32>
    %152 = vector.extract_strided_slice %151 {offsets = [0, 0], sizes = [1, 32], strides = [1, 1]} : vector<1x128xf32> to vector<1x32xf32>
    %153 = vector.broadcast %152 : vector<1x32xf32> to vector<16x32xf32>
    %154 = arith.addf %149, %153 : vector<16x32xf32>
    %155 = arith.addf %136, %154 : vector<16x32xf32>
    %cst_77 = arith.constant dense<0.000000e+00> : vector<16xf32>
    %156 = vector.multi_reduction <add>, %155, %cst_77 [1] : vector<16x32xf32> to vector<16xf32>
    %157 = vector.shape_cast %156 : vector<16xf32> to vector<16x1xf32>
    %cst_78 = arith.constant 3.200000e+01 : f32
    %158 = vector.broadcast %cst_78 : f32 to vector<16x1xf32>
    %159 = arith.divf %157, %158 : vector<16x1xf32>
    %160 = vector.broadcast %159 : vector<16x1xf32> to vector<16x32xf32>
    %161 = arith.subf %155, %160 : vector<16x32xf32>
    %162 = arith.mulf %161, %161 : vector<16x32xf32>
    %cst_79 = arith.constant dense<0.000000e+00> : vector<16xf32>
    %163 = vector.multi_reduction <add>, %162, %cst_79 [1] : vector<16x32xf32> to vector<16xf32>
    %164 = vector.shape_cast %163 : vector<16xf32> to vector<16x1xf32>
    %cst_80 = arith.constant 3.200000e+01 : f32
    %165 = vector.broadcast %cst_80 : f32 to vector<16x1xf32>
    %166 = arith.divf %164, %165 : vector<16x1xf32>
    %167 = vector.broadcast %159 : vector<16x1xf32> to vector<16x32xf32>
    %168 = arith.subf %155, %167 : vector<16x32xf32>
    %cst_81 = arith.constant 9.99999974E-6 : f32
    %169 = vector.broadcast %cst_81 : f32 to vector<16x1xf32>
    %170 = arith.addf %166, %169 : vector<16x1xf32>
    %171 = math.rsqrt %170 : vector<16x1xf32>
    %172 = vector.broadcast %171 : vector<16x1xf32> to vector<16x32xf32>
    %173 = arith.mulf %168, %172 : vector<16x32xf32>
    %c0_82 = arith.constant 0 : index
    %c8 = arith.constant 8 : index
    %c0_83 = arith.constant 0 : index
    %c0_84 = arith.constant 0 : index
    %174 = vector.load %arg7[%c0_82, %c8, %c0_83, %c0_84] : memref<2x10x1x128xf32, #tpu.memory_space<vmem>>, vector<1x1x1x128xf32>
    %175 = vector.shape_cast %174 : vector<1x1x1x128xf32> to vector<1x128xf32>
    %176 = vector.extract_strided_slice %175 {offsets = [0, 0], sizes = [1, 32], strides = [1, 1]} : vector<1x128xf32> to vector<1x32xf32>
    %177 = vector.broadcast %176 : vector<1x32xf32> to vector<16x32xf32>
    %178 = arith.mulf %173, %177 : vector<16x32xf32>
    %c0_85 = arith.constant 0 : index
    %c9 = arith.constant 9 : index
    %c0_86 = arith.constant 0 : index
    %c0_87 = arith.constant 0 : index
    %179 = vector.load %arg7[%c0_85, %c9, %c0_86, %c0_87] : memref<2x10x1x128xf32, #tpu.memory_space<vmem>>, vector<1x1x1x128xf32>
    %180 = vector.shape_cast %179 : vector<1x1x1x128xf32> to vector<1x128xf32>
    %181 = vector.extract_strided_slice %180 {offsets = [0, 0], sizes = [1, 32], strides = [1, 1]} : vector<1x128xf32> to vector<1x32xf32>
    %182 = vector.broadcast %181 : vector<1x32xf32> to vector<16x32xf32>
    %183 = arith.addf %178, %182 : vector<16x32xf32>
    %c1_88 = arith.constant 1 : index
    %c0_89 = arith.constant 0 : index
    %c0_90 = arith.constant 0 : index
    %c0_91 = arith.constant 0 : index
    %184 = vector.load %arg3[%c1_88, %c0_89, %c0_90, %c0_91] : memref<2x3x32x32xf32, #tpu.memory_space<vmem>>, vector<1x1x32x32xf32>
    %185 = vector.shape_cast %184 : vector<1x1x32x32xf32> to vector<32x32xf32>
    %cst_92 = arith.constant dense<0.000000e+00> : vector<16x32xf32>
    %186 = tpu.matmul %183, %185, %cst_92 {dimension_numbers = #tpu.dot_dimension_numbers<[1], [0], [0], [1], [0, 0, 1, 1], [], []>} : vector<16x32xf32>, vector<32x32xf32>, vector<16x32xf32> -> vector<16x32xf32>
    %c1_93 = arith.constant 1 : index
    %c0_94 = arith.constant 0 : index
    %c0_95 = arith.constant 0 : index
    %c0_96 = arith.constant 0 : index
    %187 = vector.load %arg7[%c1_93, %c0_94, %c0_95, %c0_96] : memref<2x10x1x128xf32, #tpu.memory_space<vmem>>, vector<1x1x1x128xf32>
    %188 = vector.shape_cast %187 : vector<1x1x1x128xf32> to vector<1x128xf32>
    %189 = vector.extract_strided_slice %188 {offsets = [0, 0], sizes = [1, 32], strides = [1, 1]} : vector<1x128xf32> to vector<1x32xf32>
    %190 = vector.broadcast %189 : vector<1x32xf32> to vector<16x32xf32>
    %191 = arith.addf %186, %190 : vector<16x32xf32>
    %c1_97 = arith.constant 1 : index
    %c1_98 = arith.constant 1 : index
    %c0_99 = arith.constant 0 : index
    %c0_100 = arith.constant 0 : index
    %192 = vector.load %arg3[%c1_97, %c1_98, %c0_99, %c0_100] : memref<2x3x32x32xf32, #tpu.memory_space<vmem>>, vector<1x1x32x32xf32>
    %193 = vector.shape_cast %192 : vector<1x1x32x32xf32> to vector<32x32xf32>
    %cst_101 = arith.constant dense<0.000000e+00> : vector<16x32xf32>
    %194 = tpu.matmul %183, %193, %cst_101 {dimension_numbers = #tpu.dot_dimension_numbers<[1], [0], [0], [1], [0, 0, 1, 1], [], []>} : vector<16x32xf32>, vector<32x32xf32>, vector<16x32xf32> -> vector<16x32xf32>
    %c1_102 = arith.constant 1 : index
    %c1_103 = arith.constant 1 : index
    %c0_104 = arith.constant 0 : index
    %c0_105 = arith.constant 0 : index
    %195 = vector.load %arg7[%c1_102, %c1_103, %c0_104, %c0_105] : memref<2x10x1x128xf32, #tpu.memory_space<vmem>>, vector<1x1x1x128xf32>
    %196 = vector.shape_cast %195 : vector<1x1x1x128xf32> to vector<1x128xf32>
    %197 = vector.extract_strided_slice %196 {offsets = [0, 0], sizes = [1, 32], strides = [1, 1]} : vector<1x128xf32> to vector<1x32xf32>
    %198 = vector.broadcast %197 : vector<1x32xf32> to vector<16x32xf32>
    %199 = arith.addf %194, %198 : vector<16x32xf32>
    %c1_106 = arith.constant 1 : index
    %c2_107 = arith.constant 2 : index
    %c0_108 = arith.constant 0 : index
    %c0_109 = arith.constant 0 : index
    %200 = vector.load %arg3[%c1_106, %c2_107, %c0_108, %c0_109] : memref<2x3x32x32xf32, #tpu.memory_space<vmem>>, vector<1x1x32x32xf32>
    %201 = vector.shape_cast %200 : vector<1x1x32x32xf32> to vector<32x32xf32>
    %cst_110 = arith.constant dense<0.000000e+00> : vector<16x32xf32>
    %202 = tpu.matmul %183, %201, %cst_110 {dimension_numbers = #tpu.dot_dimension_numbers<[1], [0], [0], [1], [0, 0, 1, 1], [], []>} : vector<16x32xf32>, vector<32x32xf32>, vector<16x32xf32> -> vector<16x32xf32>
    %c1_111 = arith.constant 1 : index
    %c2_112 = arith.constant 2 : index
    %c0_113 = arith.constant 0 : index
    %c0_114 = arith.constant 0 : index
    %203 = vector.load %arg7[%c1_111, %c2_112, %c0_113, %c0_114] : memref<2x10x1x128xf32, #tpu.memory_space<vmem>>, vector<1x1x1x128xf32>
    %204 = vector.shape_cast %203 : vector<1x1x1x128xf32> to vector<1x128xf32>
    %205 = vector.extract_strided_slice %204 {offsets = [0, 0], sizes = [1, 32], strides = [1, 1]} : vector<1x128xf32> to vector<1x32xf32>
    %206 = vector.broadcast %205 : vector<1x32xf32> to vector<16x32xf32>
    %207 = arith.addf %202, %206 : vector<16x32xf32>
    %208 = vector.shape_cast %191 : vector<16x32xf32> to vector<2x8x32xf32>
    %209 = vector.shape_cast %199 : vector<16x32xf32> to vector<2x8x32xf32>
    %210 = vector.shape_cast %207 : vector<16x32xf32> to vector<2x8x32xf32>
    %211 = vector.extract_strided_slice %208 {offsets = [0, 0, 0], sizes = [2, 8, 8], strides = [1, 1, 1]} : vector<2x8x32xf32> to vector<2x8x8xf32>
    %212 = vector.extract_strided_slice %209 {offsets = [0, 0, 0], sizes = [2, 8, 8], strides = [1, 1, 1]} : vector<2x8x32xf32> to vector<2x8x8xf32>
    %213 = vector.extract_strided_slice %210 {offsets = [0, 0, 0], sizes = [2, 8, 8], strides = [1, 1, 1]} : vector<2x8x32xf32> to vector<2x8x8xf32>
    "tpu.trace_start"() <{level = 10 : i32, message = "bqd,bkd->bqk"}> : () -> ()
    %cst_115 = arith.constant dense<0.000000e+00> : vector<2x8x8xf32>
    %214 = tpu.matmul %211, %212, %cst_115 {dimension_numbers = #tpu.dot_dimension_numbers<[2], [2], [1], [1], [0, 0, 0, 1, 1, 1], [0], [0]>} : vector<2x8x8xf32>, vector<2x8x8xf32>, vector<2x8x8xf32> -> vector<2x8x8xf32>
    "tpu.trace_stop"() : () -> ()
    %215 = arith.addf %214, %6 : vector<2x8x8xf32>
    %cst_116 = arith.constant dense<0xFF800000> : vector<2x8xf32>
    %216 = vector.multi_reduction <maximumf>, %215, %cst_116 [2] : vector<2x8x8xf32> to vector<2x8xf32>
    %217 = vector.shape_cast %216 : vector<2x8xf32> to vector<2x8x1xf32>
    %218 = vector.broadcast %217 : vector<2x8x1xf32> to vector<2x8x8xf32>
    %219 = arith.subf %215, %218 : vector<2x8x8xf32>
    %220 = math.exp %219 : vector<2x8x8xf32>
    %cst_117 = arith.constant dense<0.000000e+00> : vector<2x8xf32>
    %221 = vector.multi_reduction <add>, %220, %cst_117 [2] : vector<2x8x8xf32> to vector<2x8xf32>
    %222 = vector.shape_cast %221 : vector<2x8xf32> to vector<2x8x1xf32>
    %223 = tpu.reciprocal %222 {approx = true} : vector<2x8x1xf32> -> vector<2x8x1xf32>
    %224 = vector.broadcast %223 : vector<2x8x1xf32> to vector<2x8x8xf32>
    %225 = arith.mulf %220, %224 : vector<2x8x8xf32>
    "tpu.trace_start"() <{level = 10 : i32, message = "bqk,bkd->bqd"}> : () -> ()
    %cst_118 = arith.constant dense<0.000000e+00> : vector<2x8x8xf32>
    %226 = tpu.matmul %225, %213, %cst_118 {dimension_numbers = #tpu.dot_dimension_numbers<[2], [1], [1], [2], [0, 0, 0, 1, 1, 2], [0], [0]>} : vector<2x8x8xf32>, vector<2x8x8xf32>, vector<2x8x8xf32> -> vector<2x8x8xf32>
    "tpu.trace_stop"() : () -> ()
    %227 = vector.extract_strided_slice %208 {offsets = [0, 0, 8], sizes = [2, 8, 8], strides = [1, 1, 1]} : vector<2x8x32xf32> to vector<2x8x8xf32>
    %228 = vector.extract_strided_slice %209 {offsets = [0, 0, 8], sizes = [2, 8, 8], strides = [1, 1, 1]} : vector<2x8x32xf32> to vector<2x8x8xf32>
    %229 = vector.extract_strided_slice %210 {offsets = [0, 0, 8], sizes = [2, 8, 8], strides = [1, 1, 1]} : vector<2x8x32xf32> to vector<2x8x8xf32>
    "tpu.trace_start"() <{level = 10 : i32, message = "bqd,bkd->bqk"}> : () -> ()
    %cst_119 = arith.constant dense<0.000000e+00> : vector<2x8x8xf32>
    %230 = tpu.matmul %227, %228, %cst_119 {dimension_numbers = #tpu.dot_dimension_numbers<[2], [2], [1], [1], [0, 0, 0, 1, 1, 1], [0], [0]>} : vector<2x8x8xf32>, vector<2x8x8xf32>, vector<2x8x8xf32> -> vector<2x8x8xf32>
    "tpu.trace_stop"() : () -> ()
    %231 = arith.addf %230, %6 : vector<2x8x8xf32>
    %cst_120 = arith.constant dense<0xFF800000> : vector<2x8xf32>
    %232 = vector.multi_reduction <maximumf>, %231, %cst_120 [2] : vector<2x8x8xf32> to vector<2x8xf32>
    %233 = vector.shape_cast %232 : vector<2x8xf32> to vector<2x8x1xf32>
    %234 = vector.broadcast %233 : vector<2x8x1xf32> to vector<2x8x8xf32>
    %235 = arith.subf %231, %234 : vector<2x8x8xf32>
    %236 = math.exp %235 : vector<2x8x8xf32>
    %cst_121 = arith.constant dense<0.000000e+00> : vector<2x8xf32>
    %237 = vector.multi_reduction <add>, %236, %cst_121 [2] : vector<2x8x8xf32> to vector<2x8xf32>
    %238 = vector.shape_cast %237 : vector<2x8xf32> to vector<2x8x1xf32>
    %239 = tpu.reciprocal %238 {approx = true} : vector<2x8x1xf32> -> vector<2x8x1xf32>
    %240 = vector.broadcast %239 : vector<2x8x1xf32> to vector<2x8x8xf32>
    %241 = arith.mulf %236, %240 : vector<2x8x8xf32>
    "tpu.trace_start"() <{level = 10 : i32, message = "bqk,bkd->bqd"}> : () -> ()
    %cst_122 = arith.constant dense<0.000000e+00> : vector<2x8x8xf32>
    %242 = tpu.matmul %241, %229, %cst_122 {dimension_numbers = #tpu.dot_dimension_numbers<[2], [1], [1], [2], [0, 0, 0, 1, 1, 2], [0], [0]>} : vector<2x8x8xf32>, vector<2x8x8xf32>, vector<2x8x8xf32> -> vector<2x8x8xf32>
    "tpu.trace_stop"() : () -> ()
    %243 = vector.extract_strided_slice %208 {offsets = [0, 0, 16], sizes = [2, 8, 8], strides = [1, 1, 1]} : vector<2x8x32xf32> to vector<2x8x8xf32>
    %244 = vector.extract_strided_slice %209 {offsets = [0, 0, 16], sizes = [2, 8, 8], strides = [1, 1, 1]} : vector<2x8x32xf32> to vector<2x8x8xf32>
    %245 = vector.extract_strided_slice %210 {offsets = [0, 0, 16], sizes = [2, 8, 8], strides = [1, 1, 1]} : vector<2x8x32xf32> to vector<2x8x8xf32>
    "tpu.trace_start"() <{level = 10 : i32, message = "bqd,bkd->bqk"}> : () -> ()
    %cst_123 = arith.constant dense<0.000000e+00> : vector<2x8x8xf32>
    %246 = tpu.matmul %243, %244, %cst_123 {dimension_numbers = #tpu.dot_dimension_numbers<[2], [2], [1], [1], [0, 0, 0, 1, 1, 1], [0], [0]>} : vector<2x8x8xf32>, vector<2x8x8xf32>, vector<2x8x8xf32> -> vector<2x8x8xf32>
    "tpu.trace_stop"() : () -> ()
    %247 = arith.addf %246, %6 : vector<2x8x8xf32>
    %cst_124 = arith.constant dense<0xFF800000> : vector<2x8xf32>
    %248 = vector.multi_reduction <maximumf>, %247, %cst_124 [2] : vector<2x8x8xf32> to vector<2x8xf32>
    %249 = vector.shape_cast %248 : vector<2x8xf32> to vector<2x8x1xf32>
    %250 = vector.broadcast %249 : vector<2x8x1xf32> to vector<2x8x8xf32>
    %251 = arith.subf %247, %250 : vector<2x8x8xf32>
    %252 = math.exp %251 : vector<2x8x8xf32>
    %cst_125 = arith.constant dense<0.000000e+00> : vector<2x8xf32>
    %253 = vector.multi_reduction <add>, %252, %cst_125 [2] : vector<2x8x8xf32> to vector<2x8xf32>
    %254 = vector.shape_cast %253 : vector<2x8xf32> to vector<2x8x1xf32>
    %255 = tpu.reciprocal %254 {approx = true} : vector<2x8x1xf32> -> vector<2x8x1xf32>
    %256 = vector.broadcast %255 : vector<2x8x1xf32> to vector<2x8x8xf32>
    %257 = arith.mulf %252, %256 : vector<2x8x8xf32>
    "tpu.trace_start"() <{level = 10 : i32, message = "bqk,bkd->bqd"}> : () -> ()
    %cst_126 = arith.constant dense<0.000000e+00> : vector<2x8x8xf32>
    %258 = tpu.matmul %257, %245, %cst_126 {dimension_numbers = #tpu.dot_dimension_numbers<[2], [1], [1], [2], [0, 0, 0, 1, 1, 2], [0], [0]>} : vector<2x8x8xf32>, vector<2x8x8xf32>, vector<2x8x8xf32> -> vector<2x8x8xf32>
    "tpu.trace_stop"() : () -> ()
    %259 = vector.extract_strided_slice %208 {offsets = [0, 0, 24], sizes = [2, 8, 8], strides = [1, 1, 1]} : vector<2x8x32xf32> to vector<2x8x8xf32>
    %260 = vector.extract_strided_slice %209 {offsets = [0, 0, 24], sizes = [2, 8, 8], strides = [1, 1, 1]} : vector<2x8x32xf32> to vector<2x8x8xf32>
    %261 = vector.extract_strided_slice %210 {offsets = [0, 0, 24], sizes = [2, 8, 8], strides = [1, 1, 1]} : vector<2x8x32xf32> to vector<2x8x8xf32>
    "tpu.trace_start"() <{level = 10 : i32, message = "bqd,bkd->bqk"}> : () -> ()
    %cst_127 = arith.constant dense<0.000000e+00> : vector<2x8x8xf32>
    %262 = tpu.matmul %259, %260, %cst_127 {dimension_numbers = #tpu.dot_dimension_numbers<[2], [2], [1], [1], [0, 0, 0, 1, 1, 1], [0], [0]>} : vector<2x8x8xf32>, vector<2x8x8xf32>, vector<2x8x8xf32> -> vector<2x8x8xf32>
    "tpu.trace_stop"() : () -> ()
    %263 = arith.addf %262, %6 : vector<2x8x8xf32>
    %cst_128 = arith.constant dense<0xFF800000> : vector<2x8xf32>
    %264 = vector.multi_reduction <maximumf>, %263, %cst_128 [2] : vector<2x8x8xf32> to vector<2x8xf32>
    %265 = vector.shape_cast %264 : vector<2x8xf32> to vector<2x8x1xf32>
    %266 = vector.broadcast %265 : vector<2x8x1xf32> to vector<2x8x8xf32>
    %267 = arith.subf %263, %266 : vector<2x8x8xf32>
    %268 = math.exp %267 : vector<2x8x8xf32>
    %cst_129 = arith.constant dense<0.000000e+00> : vector<2x8xf32>
    %269 = vector.multi_reduction <add>, %268, %cst_129 [2] : vector<2x8x8xf32> to vector<2x8xf32>
    %270 = vector.shape_cast %269 : vector<2x8xf32> to vector<2x8x1xf32>
    %271 = tpu.reciprocal %270 {approx = true} : vector<2x8x1xf32> -> vector<2x8x1xf32>
    %272 = vector.broadcast %271 : vector<2x8x1xf32> to vector<2x8x8xf32>
    %273 = arith.mulf %268, %272 : vector<2x8x8xf32>
    "tpu.trace_start"() <{level = 10 : i32, message = "bqk,bkd->bqd"}> : () -> ()
    %cst_130 = arith.constant dense<0.000000e+00> : vector<2x8x8xf32>
    %274 = tpu.matmul %273, %261, %cst_130 {dimension_numbers = #tpu.dot_dimension_numbers<[2], [1], [1], [2], [0, 0, 0, 1, 1, 2], [0], [0]>} : vector<2x8x8xf32>, vector<2x8x8xf32>, vector<2x8x8xf32> -> vector<2x8x8xf32>
    "tpu.trace_stop"() : () -> ()
    %275 = tpu.concatenate %226, %242, %258, %274 in 2 : vector<2x8x8xf32>, vector<2x8x8xf32>, vector<2x8x8xf32>, vector<2x8x8xf32> -> vector<2x8x32xf32>
    %276 = vector.shape_cast %275 : vector<2x8x32xf32> to vector<16x32xf32>
    %c1_131 = arith.constant 1 : index
    %c0_132 = arith.constant 0 : index
    %c0_133 = arith.constant 0 : index
    %277 = vector.load %arg4[%c1_131, %c0_132, %c0_133] : memref<2x32x32xf32, #tpu.memory_space<vmem>>, vector<1x32x32xf32>
    %278 = vector.shape_cast %277 : vector<1x32x32xf32> to vector<32x32xf32>
    %cst_134 = arith.constant dense<0.000000e+00> : vector<16x32xf32>
    %279 = tpu.matmul %276, %278, %cst_134 {dimension_numbers = #tpu.dot_dimension_numbers<[1], [0], [0], [1], [0, 0, 1, 1], [], []>} : vector<16x32xf32>, vector<32x32xf32>, vector<16x32xf32> -> vector<16x32xf32>
    %c1_135 = arith.constant 1 : index
    %c3_136 = arith.constant 3 : index
    %c0_137 = arith.constant 0 : index
    %c0_138 = arith.constant 0 : index
    %280 = vector.load %arg7[%c1_135, %c3_136, %c0_137, %c0_138] : memref<2x10x1x128xf32, #tpu.memory_space<vmem>>, vector<1x1x1x128xf32>
    %281 = vector.shape_cast %280 : vector<1x1x1x128xf32> to vector<1x128xf32>
    %282 = vector.extract_strided_slice %281 {offsets = [0, 0], sizes = [1, 32], strides = [1, 1]} : vector<1x128xf32> to vector<1x32xf32>
    %283 = vector.broadcast %282 : vector<1x32xf32> to vector<16x32xf32>
    %284 = arith.addf %279, %283 : vector<16x32xf32>
    %285 = arith.addf %183, %284 : vector<16x32xf32>
    %cst_139 = arith.constant dense<0.000000e+00> : vector<16xf32>
    %286 = vector.multi_reduction <add>, %285, %cst_139 [1] : vector<16x32xf32> to vector<16xf32>
    %287 = vector.shape_cast %286 : vector<16xf32> to vector<16x1xf32>
    %cst_140 = arith.constant 3.200000e+01 : f32
    %288 = vector.broadcast %cst_140 : f32 to vector<16x1xf32>
    %289 = arith.divf %287, %288 : vector<16x1xf32>
    %290 = vector.broadcast %289 : vector<16x1xf32> to vector<16x32xf32>
    %291 = arith.subf %285, %290 : vector<16x32xf32>
    %292 = arith.mulf %291, %291 : vector<16x32xf32>
    %cst_141 = arith.constant dense<0.000000e+00> : vector<16xf32>
    %293 = vector.multi_reduction <add>, %292, %cst_141 [1] : vector<16x32xf32> to vector<16xf32>
    %294 = vector.shape_cast %293 : vector<16xf32> to vector<16x1xf32>
    %cst_142 = arith.constant 3.200000e+01 : f32
    %295 = vector.broadcast %cst_142 : f32 to vector<16x1xf32>
    %296 = arith.divf %294, %295 : vector<16x1xf32>
    %297 = vector.broadcast %289 : vector<16x1xf32> to vector<16x32xf32>
    %298 = arith.subf %285, %297 : vector<16x32xf32>
    %cst_143 = arith.constant 9.99999974E-6 : f32
    %299 = vector.broadcast %cst_143 : f32 to vector<16x1xf32>
    %300 = arith.addf %296, %299 : vector<16x1xf32>
    %301 = math.rsqrt %300 : vector<16x1xf32>
    %302 = vector.broadcast %301 : vector<16x1xf32> to vector<16x32xf32>
    %303 = arith.mulf %298, %302 : vector<16x32xf32>
    %c1_144 = arith.constant 1 : index
    %c4_145 = arith.constant 4 : index
    %c0_146 = arith.constant 0 : index
    %c0_147 = arith.constant 0 : index
    %304 = vector.load %arg7[%c1_144, %c4_145, %c0_146, %c0_147] : memref<2x10x1x128xf32, #tpu.memory_space<vmem>>, vector<1x1x1x128xf32>
    %305 = vector.shape_cast %304 : vector<1x1x1x128xf32> to vector<1x128xf32>
    %306 = vector.extract_strided_slice %305 {offsets = [0, 0], sizes = [1, 32], strides = [1, 1]} : vector<1x128xf32> to vector<1x32xf32>
    %307 = vector.broadcast %306 : vector<1x32xf32> to vector<16x32xf32>
    %308 = arith.mulf %303, %307 : vector<16x32xf32>
    %c1_148 = arith.constant 1 : index
    %c5_149 = arith.constant 5 : index
    %c0_150 = arith.constant 0 : index
    %c0_151 = arith.constant 0 : index
    %309 = vector.load %arg7[%c1_148, %c5_149, %c0_150, %c0_151] : memref<2x10x1x128xf32, #tpu.memory_space<vmem>>, vector<1x1x1x128xf32>
    %310 = vector.shape_cast %309 : vector<1x1x1x128xf32> to vector<1x128xf32>
    %311 = vector.extract_strided_slice %310 {offsets = [0, 0], sizes = [1, 32], strides = [1, 1]} : vector<1x128xf32> to vector<1x32xf32>
    %312 = vector.broadcast %311 : vector<1x32xf32> to vector<16x32xf32>
    %313 = arith.addf %308, %312 : vector<16x32xf32>
    %c1_152 = arith.constant 1 : index
    %c0_153 = arith.constant 0 : index
    %c0_154 = arith.constant 0 : index
    %314 = vector.load %arg5[%c1_152, %c0_153, %c0_154] : memref<2x32x64xf32, #tpu.memory_space<vmem>>, vector<1x32x64xf32>
    %315 = vector.shape_cast %314 : vector<1x32x64xf32> to vector<32x64xf32>
    %cst_155 = arith.constant dense<0.000000e+00> : vector<16x64xf32>
    %316 = tpu.matmul %313, %315, %cst_155 {dimension_numbers = #tpu.dot_dimension_numbers<[1], [0], [0], [1], [0, 0, 1, 1], [], []>} : vector<16x32xf32>, vector<32x64xf32>, vector<16x64xf32> -> vector<16x64xf32>
    %c1_156 = arith.constant 1 : index
    %c6_157 = arith.constant 6 : index
    %c0_158 = arith.constant 0 : index
    %c0_159 = arith.constant 0 : index
    %317 = vector.load %arg7[%c1_156, %c6_157, %c0_158, %c0_159] : memref<2x10x1x128xf32, #tpu.memory_space<vmem>>, vector<1x1x1x128xf32>
    %318 = vector.shape_cast %317 : vector<1x1x1x128xf32> to vector<1x128xf32>
    %319 = vector.extract_strided_slice %318 {offsets = [0, 0], sizes = [1, 64], strides = [1, 1]} : vector<1x128xf32> to vector<1x64xf32>
    %320 = vector.broadcast %319 : vector<1x64xf32> to vector<16x64xf32>
    %321 = arith.addf %316, %320 : vector<16x64xf32>
    %cst_160 = arith.constant 0.000000e+00 : f32
    %322 = vector.broadcast %cst_160 : f32 to vector<16x64xf32>
    %323 = arith.maximumf %321, %322 : vector<16x64xf32>
    %c1_161 = arith.constant 1 : index
    %c0_162 = arith.constant 0 : index
    %c0_163 = arith.constant 0 : index
    %324 = vector.load %arg6[%c1_161, %c0_162, %c0_163] : memref<2x64x32xf32, #tpu.memory_space<vmem>>, vector<1x64x32xf32>
    %325 = vector.shape_cast %324 : vector<1x64x32xf32> to vector<64x32xf32>
    %cst_164 = arith.constant dense<0.000000e+00> : vector<16x32xf32>
    %326 = tpu.matmul %323, %325, %cst_164 {dimension_numbers = #tpu.dot_dimension_numbers<[1], [0], [0], [1], [0, 0, 1, 1], [], []>} : vector<16x64xf32>, vector<64x32xf32>, vector<16x32xf32> -> vector<16x32xf32>
    %c1_165 = arith.constant 1 : index
    %c7_166 = arith.constant 7 : index
    %c0_167 = arith.constant 0 : index
    %c0_168 = arith.constant 0 : index
    %327 = vector.load %arg7[%c1_165, %c7_166, %c0_167, %c0_168] : memref<2x10x1x128xf32, #tpu.memory_space<vmem>>, vector<1x1x1x128xf32>
    %328 = vector.shape_cast %327 : vector<1x1x1x128xf32> to vector<1x128xf32>
    %329 = vector.extract_strided_slice %328 {offsets = [0, 0], sizes = [1, 32], strides = [1, 1]} : vector<1x128xf32> to vector<1x32xf32>
    %330 = vector.broadcast %329 : vector<1x32xf32> to vector<16x32xf32>
    %331 = arith.addf %326, %330 : vector<16x32xf32>
    %332 = arith.addf %313, %331 : vector<16x32xf32>
    %cst_169 = arith.constant dense<0.000000e+00> : vector<16xf32>
    %333 = vector.multi_reduction <add>, %332, %cst_169 [1] : vector<16x32xf32> to vector<16xf32>
    %334 = vector.shape_cast %333 : vector<16xf32> to vector<16x1xf32>
    %cst_170 = arith.constant 3.200000e+01 : f32
    %335 = vector.broadcast %cst_170 : f32 to vector<16x1xf32>
    %336 = arith.divf %334, %335 : vector<16x1xf32>
    %337 = vector.broadcast %336 : vector<16x1xf32> to vector<16x32xf32>
    %338 = arith.subf %332, %337 : vector<16x32xf32>
    %339 = arith.mulf %338, %338 : vector<16x32xf32>
    %cst_171 = arith.constant dense<0.000000e+00> : vector<16xf32>
    %340 = vector.multi_reduction <add>, %339, %cst_171 [1] : vector<16x32xf32> to vector<16xf32>
    %341 = vector.shape_cast %340 : vector<16xf32> to vector<16x1xf32>
    %cst_172 = arith.constant 3.200000e+01 : f32
    %342 = vector.broadcast %cst_172 : f32 to vector<16x1xf32>
    %343 = arith.divf %341, %342 : vector<16x1xf32>
    %344 = vector.broadcast %336 : vector<16x1xf32> to vector<16x32xf32>
    %345 = arith.subf %332, %344 : vector<16x32xf32>
    %cst_173 = arith.constant 9.99999974E-6 : f32
    %346 = vector.broadcast %cst_173 : f32 to vector<16x1xf32>
    %347 = arith.addf %343, %346 : vector<16x1xf32>
    %348 = math.rsqrt %347 : vector<16x1xf32>
    %349 = vector.broadcast %348 : vector<16x1xf32> to vector<16x32xf32>
    %350 = arith.mulf %345, %349 : vector<16x32xf32>
    %c1_174 = arith.constant 1 : index
    %c8_175 = arith.constant 8 : index
    %c0_176 = arith.constant 0 : index
    %c0_177 = arith.constant 0 : index
    %351 = vector.load %arg7[%c1_174, %c8_175, %c0_176, %c0_177] : memref<2x10x1x128xf32, #tpu.memory_space<vmem>>, vector<1x1x1x128xf32>
    %352 = vector.shape_cast %351 : vector<1x1x1x128xf32> to vector<1x128xf32>
    %353 = vector.extract_strided_slice %352 {offsets = [0, 0], sizes = [1, 32], strides = [1, 1]} : vector<1x128xf32> to vector<1x32xf32>
    %354 = vector.broadcast %353 : vector<1x32xf32> to vector<16x32xf32>
    %355 = arith.mulf %350, %354 : vector<16x32xf32>
    %c1_178 = arith.constant 1 : index
    %c9_179 = arith.constant 9 : index
    %c0_180 = arith.constant 0 : index
    %c0_181 = arith.constant 0 : index
    %356 = vector.load %arg7[%c1_178, %c9_179, %c0_180, %c0_181] : memref<2x10x1x128xf32, #tpu.memory_space<vmem>>, vector<1x1x1x128xf32>
    %357 = vector.shape_cast %356 : vector<1x1x1x128xf32> to vector<1x128xf32>
    %358 = vector.extract_strided_slice %357 {offsets = [0, 0], sizes = [1, 32], strides = [1, 1]} : vector<1x128xf32> to vector<1x32xf32>
    %359 = vector.broadcast %358 : vector<1x32xf32> to vector<16x32xf32>
    %360 = arith.addf %355, %359 : vector<16x32xf32>
    %361 = vector.extract_strided_slice %360 {offsets = [0, 0], sizes = [4, 32], strides = [1, 1]} : vector<16x32xf32> to vector<4x32xf32>
    %362 = vector.extract_strided_slice %360 {offsets = [4, 0], sizes = [4, 32], strides = [1, 1]} : vector<16x32xf32> to vector<4x32xf32>
    %363 = vector.extract_strided_slice %360 {offsets = [8, 0], sizes = [4, 32], strides = [1, 1]} : vector<16x32xf32> to vector<4x32xf32>
    %364 = vector.extract_strided_slice %360 {offsets = [12, 0], sizes = [4, 32], strides = [1, 1]} : vector<16x32xf32> to vector<4x32xf32>
    %365 = tpu.concatenate %361, %362, %363, %364 in 1 : vector<4x32xf32>, vector<4x32xf32>, vector<4x32xf32>, vector<4x32xf32> -> vector<4x128xf32>
    %c0_182 = arith.constant 0 : index
    %c0_183 = arith.constant 0 : index
    %366 = vector.load %arg8[%c0_182, %c0_183] : memref<4x128xf32, #tpu.memory_space<vmem>>, vector<4x128xf32>
    tpu.vector_store %arg8[%c0_182, %c0_183], %365 {strides = array<i32>} : memref<4x128xf32, #tpu.memory_space<vmem>>, vector<4x128xf32>,
    return
  }
  func.func @transform_0(%arg0: i32) -> (i32, i32) {
    %c0_i32 = arith.constant 0 : i32
    %c0_i32_0 = arith.constant 0 : i32
    %c0_i32_1 = arith.constant 0 : i32
    return %c0_i32, %c0_i32_0 : i32, i32
  }
  func.func @transform_1(%arg0: i32) -> (i32, i32, i32) {
    %c0_i32 = arith.constant 0 : i32
    %c0_i32_0 = arith.constant 0 : i32
    %c0_i32_1 = arith.constant 0 : i32
    %c0_i32_2 = arith.constant 0 : i32
    return %c0_i32, %c0_i32_0, %c0_i32_1 : i32, i32, i32
  }
  func.func @transform_2(%arg0: i32) -> (i32, i32, i32, i32) {
    %c0_i32 = arith.constant 0 : i32
    %c0_i32_0 = arith.constant 0 : i32
    %c0_i32_1 = arith.constant 0 : i32
    %c0_i32_2 = arith.constant 0 : i32
    %c0_i32_3 = arith.constant 0 : i32
    return %c0_i32, %c0_i32_0, %c0_i32_1, %c0_i32_2 : i32, i32, i32, i32
  }
  func.func @transform_3(%arg0: i32) -> (i32, i32, i32) {
    %c0_i32 = arith.constant 0 : i32
    %c0_i32_0 = arith.constant 0 : i32
    %c0_i32_1 = arith.constant 0 : i32
    %c0_i32_2 = arith.constant 0 : i32
    return %c0_i32, %c0_i32_0, %c0_i32_1 : i32, i32, i32
  }
  func.func @transform_4(%arg0: i32) -> (i32, i32, i32) {
    %c0_i32 = arith.constant 0 : i32
    %c0_i32_0 = arith.constant 0 : i32
    %c0_i32_1 = arith.constant 0 : i32
    %c0_i32_2 = arith.constant 0 : i32
    return %c0_i32, %c0_i32_0, %c0_i32_1 : i32, i32, i32
  }
  func.func @transform_5(%arg0: i32) -> (i32, i32, i32) {
    %c0_i32 = arith.constant 0 : i32
    %c0_i32_0 = arith.constant 0 : i32
    %c0_i32_1 = arith.constant 0 : i32
    %c0_i32_2 = arith.constant 0 : i32
    return %c0_i32, %c0_i32_0, %c0_i32_1 : i32, i32, i32
  }
  func.func @transform_6(%arg0: i32) -> (i32, i32, i32, i32) {
    %c0_i32 = arith.constant 0 : i32
    %c0_i32_0 = arith.constant 0 : i32
    %c0_i32_1 = arith.constant 0 : i32
    %c0_i32_2 = arith.constant 0 : i32
    %c0_i32_3 = arith.constant 0 : i32
    return %c0_i32, %c0_i32_0, %c0_i32_1, %c0_i32_2 : i32, i32, i32, i32
  }
  func.func @transform_7(%arg0: i32) -> (i32, i32) {
    %c0_i32 = arith.constant 0 : i32
    %c0_i32_0 = arith.constant 0 : i32
    %c0_i32_1 = arith.constant 0 : i32
    return %c0_i32, %c0_i32_0 : i32, i32
  }
}

</mosaic_0001>

<bundles_post_ra>
// kernel: tpu_custom_call.1
= control target key start
LH: loop header
LB: loop body
LE: loop exit
PB: predicated region body
PF: predicated region fallthrough
CT: control target
= control target key end

     0   :  { %12 = vsyncpa [#allocation3], 0  ;;  %s5779_s0 = inlined_call_operand.hbm [shape: f32[4,128], index: 0, kind: input, shape index: {}]   ;;  %s5780_s1 = inlined_call_operand.hbm [shape: f32[2,8,8], index: 1, kind: input, shape index: {}]   ;;  %s5781_s2 = inlined_call_operand.vmem [shape: f32[2,3,32,32], index: 2, kind: input, shape index: {}]   ;;  %s5782_s3 = inlined_call_operand.hbm [shape: f32[2,32,32], index: 3, kind: input, shape index: {}]   ;;  %s5783_s4 = inlined_call_operand.hbm [shape: f32[2,32,64], index: 4, kind: input, shape index: {}]   ;;  %s5784_s5 = inlined_call_operand.vmem [shape: f32[2,64,32], index: 5, kind: input, shape index: {}]   ;;  %s5785_s6 = inlined_call_operand.vmem [shape: f32[2,10,1,128], index: 6, kind: input, shape index: {}]   ;;  %s5786_s7 = inlined_call_operand.hbm [shape: f32[4,128], index: 7, kind: output, shape index: {}]  }
   0x1   :  { %13 = vsyncpa [#allocation6], 0 }
   0x2   :  { %14 = vsyncpa [#allocation9], 0 }
   0x3   :  { %15 = vsyncpa [#allocation4], 0  ;;  %s5045_s24 = smov [#allocation5]   ;;  %s4927_s28 = scalar_lea.hbm %s5780_s1, 256 }
   0x4   :  { %s31_s25 = sshll.u32 %s5045_s24, 4  ;;  %p4928_p0 = scmp.ne.s32.totalorder %s5780_s1, %s4927_s28  ;;  %s32_s25 = int_to_ptr.vmem [resolvable:$true] %s31_s25 }
   0x5   :  { %p4931_p1 = scmp.lt.u32.totalorder %s4927_s28, %s5780_s1 }
   0x7   :  { %p4933_p2 = pnand %p4931_p1, %p4928_p0 }
   0x9   :  { %4936 = shalt.err (!%p4933_p2)
}
   0xa   :  { %s4937_s10 = scalar_lea.vmem %s32_s25, 256  ;;  %p4942_p4 = scmp.lt.s32.totalorder %s32_s25, %s32_s25 }
   0xb   :  { %p4938_p3 = scmp.ne.s32.totalorder %s32_s25, %s4937_s10  ;;  %p4943_p5 = scmp.lt.s32.totalorder %s4937_s10, %s4937_s10 }
   0xd   :  { %p4944_p6 = por %p4943_p5, %p4942_p4 }
   0xf   :  { %p4945_p7 = pnand %p4944_p6, %p4938_p3 }
  0x11   :  { %4948 = shalt.err (!%p4945_p7)
}
  0x12   :  { %s5046_s11 = smov 128   ;;  %s5047_s12 = smov 8  }
  0x13   :  { %37 = dma.hbm_to_vmem [thread:$0]  %s5780_s1, 256, %s32_s25, [#allocation6], %s5046_s11, %s5046_s11, %s5047_s12  }
  0x14   :  { %s5048_s15 = smov [#allocation2]   ;;  %s5049_s17 = smov [#allocation7]  }
  0x15   :  { %s22_s16 = sshll.u32 %s5048_s15, 4  ;;  %s45_s18 = sshll.u32 %s5049_s17, 4  ;;  %s23_s16 = int_to_ptr.vmem [resolvable:$true] %s22_s16  ;;  %s46_s18 = int_to_ptr.vmem [resolvable:$true] %s45_s18 }
  0x16   :  { %s4949_s21 = scalar_lea.hbm %s5779_s0, 64 }
  0x17   :  { %p4950_p8 = scmp.ne.s32.totalorder %s5779_s0, %s4949_s21  ;;  %p4953_p9 = scmp.lt.u32.totalorder %s4949_s21, %s5779_s0 }
  0x19   :  { %p4955_p10 = pnand %p4953_p9, %p4950_p8 }
  0x1b   :  { %4958 = shalt.err (!%p4955_p10)
}
  0x1c   :  { %s4959_s1 = scalar_lea.vmem %s23_s16, 64  ;;  %p4964_p12 = scmp.lt.s32.totalorder %s23_s16, %s23_s16 }
  0x1d   :  { %p4960_p11 = scmp.ne.s32.totalorder %s23_s16, %s4959_s1  ;;  %p4965_p13 = scmp.lt.s32.totalorder %s4959_s1, %s4959_s1 }
  0x1f   :  { %p4966_p0 = por %p4965_p13, %p4964_p12 }
  0x21   :  { %p4967_p1 = pnand %p4966_p0, %p4960_p11 }
  0x23   :  { %4970 = shalt.err (!%p4967_p1)
}
  0x24   :  { %25 = dma.hbm_to_vmem [thread:$0]  %s5779_s0, 64, %s23_s16, [#allocation3]  }
  0x25   :  { %s4971_s30 = scalar_lea.hbm %s5782_s3, 1024 }
  0x26   :  { %p4972_p2 = scmp.ne.s32.totalorder %s5782_s3, %s4971_s30  ;;  %p4975_p3 = scmp.lt.u32.totalorder %s4971_s30, %s5782_s3 }
  0x28   :  { %p4977_p4 = pnand %p4975_p3, %p4972_p2 }
  0x2a   :  { %4980 = shalt.err (!%p4977_p4)
}
  0x2b   :  { %s4981_s14 = scalar_lea.vmem %s46_s18, 1024  ;;  %p4986_p6 = scmp.lt.s32.totalorder %s46_s18, %s46_s18 }
  0x2c   :  { %p4982_p5 = scmp.ne.s32.totalorder %s46_s18, %s4981_s14  ;;  %p4987_p7 = scmp.lt.s32.totalorder %s4981_s14, %s4981_s14 }
  0x2e   :  { %p4988_p8 = por %p4987_p7, %p4986_p6 }
  0x30   :  { %p4989_p9 = pnand %p4988_p8, %p4982_p5 }
  0x32   :  { %4992 = shalt.err (!%p4989_p9)
}
  0x33   :  { %51 = dma.hbm_to_vmem [thread:$0]  %s5782_s3, 1024, %s46_s18, [#allocation6], %s5046_s11, %s5046_s11, %s5047_s12  }
  0x34   :  { %s5050_s16 = smov [#allocation8]   ;;  %s4993_s21 = scalar_lea.hbm %s5783_s4, 1024 }
  0x35   :  { %s57_s17 = sshll.u32 %s5050_s16, 4  ;;  %p4994_p10 = scmp.ne.s32.totalorder %s5783_s4, %s4993_s21  ;;  %s58_s17 = int_to_ptr.vmem [resolvable:$true] %s57_s17 }
  0x36   :  { %p4997_p11 = scmp.lt.u32.totalorder %s4993_s21, %s5783_s4 }
  0x38   :  { %p4999_p12 = pnand %p4997_p11, %p4994_p10 }
  0x3a   :  { %5002 = shalt.err (!%p4999_p12)
}
  0x3b   :  { %s5003_s1 = scalar_lea.vmem %s58_s17, 1024  ;;  %p5008_p0 = scmp.lt.s32.totalorder %s58_s17, %s58_s17 }
  0x3c   :  { %p5004_p13 = scmp.ne.s32.totalorder %s58_s17, %s5003_s1  ;;  %p5009_p1 = scmp.lt.s32.totalorder %s5003_s1, %s5003_s1 }
  0x3e   :  { %p5010_p2 = por %p5009_p1, %p5008_p0 }
  0x40   :  { %p5011_p3 = pnand %p5010_p2, %p5004_p13 }
  0x42   :  { %5014 = shalt.err (!%p5011_p3)
}
  0x43   :  { %63 = dma.hbm_to_vmem [thread:$0]  %s5783_s4, 1024, %s58_s17, [#allocation9], %s5046_s11, %s5046_s11, %s5047_s12  }
  0x44   :  { %5037 = dma.done.wait [#allocation3], 64  }
  0x45   :  { %5038 = vsyncadd [#allocation3], 4294967232 }
  0x46   :  { %5039 = dma.done.wait [#allocation6], 1280  }
  0x47   :  { %5040 = vsyncadd [#allocation6], 4294966016 }
  0x48   :  { %5041 = dma.done.wait [#allocation9], 1024  }
  0x49   :  { %5042 = vsyncadd [#allocation9], 4294966272  ;;  %v80_v0 = vld [vmem:[#allocation2] sm:$0xf]  ;;  %v98_v2 = vld [vmem:[%s5781_s2 + $0x8] sm:$0xff]  ;;  %s5051_s19 = smov 96  }
  0x4a   :  { %v97_v1 = vld [vmem:[%s5781_s2] sm:$0xff]  ;;  %v82_v3 = vrot.slane %v80_v0, 4  ;;  %v4137_v6 = vld [vmem:[%s5781_s2 + $0x48] sm:$0xff]  ;;  %v99_v7 = vld [vmem:[%s5781_s2 + $0x10] sm:$0xff]  ;;  %s5052_s20 = smov 32   ;;  %s5053_s26 = smov 64  }
  0x4b   :  { %v4716_v4 = vpack.c.bf16 %v98_v2, %v97_v1  ;;  %v4136_v5 = vld [vmem:[%s5781_s2 + $0x40] sm:$0xff]  ;;  %v100_v9 = vld [vmem:[%s5781_s2 + $0x18] sm:$0xff]  ;;  %v4138_v10 = vld [vmem:[%s5781_s2 + $0x50] sm:$0xff]  ;;  %vm92_vm0 = vcmask 1043456   ;;  %vm108_vm1 = vcmask 261120   ;;  %v5054_v25 = vmov 0.0  }
  0x4c   :  { %v4732_v8 = vpack.c.bf16 %v4137_v6, %v4136_v5  ;;  %v4139_v11 = vld [vmem:[%s5781_s2 + $0x58] sm:$0xff]  ;;  %83 = vrot.lane.b32.xlu0 %v82_v3, %s5051_s19  ;;  %89 = vrot.lane.b32.xlu1 %v82_v3, %s5052_s20  ;;  %v4720_v12 = vpack.c.bf16 %v100_v9, %v99_v7  ;;  %v4128_v14 = vld [vmem:[%s5781_s2 + $0x20] sm:$0xff]  ;;  %vm5055_vm2 = vmmov 0   ;;  %vm366_vm3 = vcmask 64512   ;;  %v5262_v45 = vld [vmem:[#allocation5 + $0x8] sm:$0xff]  ;;  %s5056_s11 = smov 120  }
  0x4d   :  { %v4736_v13 = vpack.c.bf16 %v4139_v11, %v4138_v10  ;;  %v4129_v15 = vld [vmem:[%s5781_s2 + $0x28] sm:$0xff]  ;;  %4717 = vmatprep.subr.bf16.mxu1 %v4716_v4  ;;  %v4130_v19 = vld [vmem:[%s5781_s2 + $0x30] sm:$0xff]  ;;  %v4131_v20 = vld [vmem:[%s5781_s2 + $0x38] sm:$0xff]  ;;  %s5057_s9 = smov 112   ;;  %s5058_s10 = smov 104   ;;  %vm1708_vm4 = vcmask 195584  }
  0x4e   :  { %4733 = vmatprep.subr.bf16.mxu0 %v4732_v8  ;;  %4719 = vmatpush3.bf16.msra.mxu1 %v4716_v4  ;;  %v4724_v16 = vpack.c.bf16 %v4129_v15, %v4128_v14  ;;  %v4728_v23 = vpack.c.bf16 %v4131_v20, %v4130_v19  ;;  %v4141_v26 = vld [vmem:[%s5785_s6 + $0x2] ss:$0 sm:$0xff]  ;;  %v4133_v32 = vld [vmem:[%s5785_s6 + $0x1] ss:$0 sm:$0xff]  ;;  %v4125_v35 = vld [vmem:[%s5785_s6] ss:$0 sm:$0xff] }
  0x4f   :  { %4735 = vmatpush3.bf16.msra.mxu0 %v4732_v8  ;;  %4721 = vmatprep.subr.bf16.mxu1 %v4720_v12  ;;  %v5259_v41 = vld [vmem:[#allocation5] sm:$0xff]  ;;  %s5059_s13 = smov 16   ;;  %s5060_s14 = smov 24   ;;  %vm1705_vm5 = vcmask 130048   ;;  %vm1964_vm6 = vcmask 523264   ;;  %vm4105_vm7 = vcmask 785408  }
  0x50   :  { %4737 = vmatprep.subr.bf16.mxu0 %v4736_v13  ;;  %86 = vrot.lane.b32.xlu0 %v80_v0, %s5053_s26 }
  0x52   :  { %4723 = vmatpush3.bf16.msra.mxu1 %v4720_v12 }
  0x53   :  { %4739 = vmatpush3.bf16.msra.mxu0 %v4736_v13  ;;  %4725 = vmatprep.subr.bf16.mxu1 %v4724_v16 }
  0x54   :  { %4451 = vmatprep.subr.mxu0 %v5054_v25 }
  0xbe   :  { %v84_v17 = vpop.permute.xlu0 %83  ;;  %v90_v21 = vpop.permute.xlu1 %89 }
  0xbf   :  { %v5192_v18 = vsel %vm92_vm0, %v80_v0, %v84_v17 }
  0xc0   :  { %4416 = vmatprep.mubr.msk.f32.mxu1 %vm108_vm1, %v5192_v18  ;;  %4438 = vmatprep.mubr.msk.f32.mxu0 %vm108_vm1, %v5192_v18 }
  0xc2   :  { %v87_v22 = vpop.permute.xlu0 %86 }
  0xc3   :  { %v5204_v24 = vsel %vm92_vm0, %v87_v22, %v90_v21 }
  0xc4   :  { %4417 = vmatmul.mubr.msk.f32.vlgmr.msra.gmra.mrb[0].mxu1 %vm108_vm1, %v5204_v24  ;;  %4439 = vmatmul.mubr.msk.f32.vlgmr.msra.gmra.mrb[0].mxu0 %vm108_vm1, %v5204_v24 }
  0xc5   :  { %4727 = vmatpush3.bf16.msra.mxu1 %v4724_v16  ;;  %4427 = vmatprep.mubr.msk.f32.mxu1 %vm108_vm1, %v5192_v18 }
  0xc6   :  { %4729 = vmatprep.subr.bf16.mxu1 %v4728_v23  ;;  %4453 = vmatprep.mubr.msk.f32.mxu0 %vm5055_vm2, %v5054_v25 }
  0xc9   :  { %4731 = vmatpush3.bf16.msra.mxu1 %v4728_v23 }
  0xca   :  { %4441 = vmatprep.subr.mxu1 %v5054_v25 }
  0xcc   :  { %4428 = vmatmul.mubr.msk.f32.vlgmr.msra.gmra.mrb[2].mxu1 %vm108_vm1, %v5204_v24 }
  0xcd   :  { %4443 = vmatprep.mubr.msk.f32.mxu1 %vm5055_vm2, %v5054_v25 }
 0x197   :  { %v4418_v27 = vpop.f32.mrb[0].mxu1  ;;  %v4440_v28 = vpop.f32.mrb[0].mxu0 }
 0x198   :  { %v181_v29 = vpop.f32.mrb[1].mxu1  ;;  %v357_v30 = vpop.f32.mrb[1].mxu0  ;;  %v5248_v39 = vadd.f32 %v4418_v27, %v4125_v35  ;;  %v5251_v40 = vadd.f32 %v4440_v28, %v4141_v26 }
 0x199   :  { %v5223_v31 = vadd.f32 %v4141_v26, %v357_v30  ;;  %v5237_v37 = vadd.f32 %v4125_v35, %v181_v29 }
 0x19b   :  { %4452 = vmatpush3.msra.mxu0 %v5223_v31 }
 0x19c   :  { %4461 = vmatprep.subr.mxu0 %v5054_v25 }
 0x19f   :  { %v4429_v33 = vpop.f32.mrb[2].mxu1 }
 0x1a0   :  { %v269_v34 = vpop.f32.mrb[3].mxu1  ;;  %v5240_v38 = vadd.f32 %v4429_v33, %v4133_v32 }
 0x1a1   :  { %v5233_v36 = vadd.f32 %v4133_v32, %v269_v34 }
 0x1a3   :  { %4442 = vmatpush3.xpose.msk.msra.mxu1 %vm366_vm3, %v5233_v36 }
 0x1a4   :  { %4446 = vmatprep.subr.mxu1 %v5054_v25 }
 0x1a6   :  { %4444 = vmatmul.mubr.msk.f32.vlgmr.msra.gmra.mrb[4].mxu1 %vm366_vm3, %v5237_v37 }
 0x1a7   :  { %4447 = vmatpush3.xpose.msk.msra.mxu1 %vm366_vm3, %v5240_v38  ;;  %4448 = vmatprep.mubr.msk.f32.mxu1 %vm5055_vm2, %v5054_v25 }
 0x1a8   :  { %4456 = vmatprep.subr.mxu1 %v5054_v25 }
 0x1aa   :  { %4449 = vmatmul.mubr.msk.f32.vlgmr.msra.gmra.mrb[6].mxu1 %vm366_vm3, %v5248_v39 }
 0x1ab   :  { %4457 = vmatpush3.msra.mxu1 %v5251_v40  ;;  %4458 = vmatprep.mubr.msk.f32.mxu1 %vm5055_vm2, %v5054_v25 }
 0x1ac   :  { %4466 = vmatprep.subr.mxu1 %v5054_v25 }
 0x279   :  { %v439_v42 = vpop.f32.mrb[4].mxu1 }
 0x27a   :  { %v440_v43 = vadd.f32 %v439_v42, %v5259_v41  ;;  %v4445_v44 = vpop.f32.mrb[5].mxu1 }
 0x27c   :  { %v519_v46 = vsel %vm366_vm3, %v440_v43, -inf }
 0x27d   :  { %520 = vmax.xlane.f32.xlu1 %v519_v46  ;;  %v515_v47 = vpop.f32.mrb[6].mxu1 }
 0x27e   :  { %v516_v48 = vadd.f32 %v515_v47, %v5262_v45  ;;  %v4450_v49 = vpop.f32.mrb[7].mxu1 }
 0x280   :  { %v522_v50 = vsel %vm366_vm3, %v516_v48, -inf }
 0x281   :  { %523 = vmax.xlane.f32.xlu0 %v522_v50 }
 0x28e   :  { %767 = vrot.lane.b32.xlu1 %v5240_v38, %s5056_s11 }
 0x30a   :  { %v521_v51 = vpop.xlane.xlu1 %520 }
 0x30b   :  { %v525_v52 = vsub.f32 %v440_v43, %v521_v51 }
 0x30d   :  { %v527_v53 = vmul.f32 1.442695, %v525_v52 }
 0x30e   :  { %v524_v54 = vpop.xlane.xlu0 %523  ;;  %v768_v61 = vpop.permute.xlu1 %767 }
 0x30f   :  { %4845 = vpow2.f32 %v527_v53  ;;  %v526_v55 = vsub.f32 %v516_v48, %v524_v54 }
 0x311   :  { %v529_v56 = vmul.f32 1.442695, %v526_v55 }
 0x313   :  { %4847 = vpow2.f32 %v529_v56 }
 0x319   :  { %v4846_v57 = vpop.eup %4845 }
 0x31a   :  { %v531_v58 = vsel %vm366_vm3, %v4846_v57, 0.0 }
 0x31b   :  { %532 = vadd.xlane.f32.xlu0 %v531_v58 }
 0x31d   :  { %v4848_v59 = vpop.eup %4847 }
 0x31e   :  { %v534_v60 = vsel %vm366_vm3, %v4848_v59, 0.0 }
 0x31f   :  { %535 = vadd.xlane.f32.xlu1 %v534_v60 }
 0x330   :  { %687 = vrot.lane.b32.xlu1 %v5237_v37, %s5056_s11 }
 0x331   :  { %689 = vrot.lane.b32.xlu0 %v5233_v36, %s5056_s11 }
 0x335   :  { %765 = vrot.lane.b32.xlu0 %v5248_v39, %s5056_s11 }
 0x3a8   :  { %v533_v62 = vpop.xlane.xlu0 %532 }
 0x3a9   :  { %4849 = vrcp.f32 %v533_v62 }
 0x3ac   :  { %v536_v63 = vpop.xlane.xlu1 %535  ;;  %v690_v2 = vpop.permute.xlu0 %689 }
 0x3ad   :  { %4851 = vrcp.f32 %v536_v63 }
 0x3b0   :  { %v688_v5 = vpop.permute.xlu1 %687  ;;  %v766_v6 = vpop.permute.xlu0 %765 }
 0x3b3   :  { %v4850_v0 = vpop.eup %4849 }
 0x3b4   :  { %v539_v1 = vmul.f32 %v4850_v0, %v4846_v57 }
 0x3b6   :  { %4454 = vmatmul.mubr.msk.f32.vlgmr.msra.gmra.mrb[2].mxu0 %vm366_vm3, %v539_v1 }
 0x3b7   :  { %v4852_v3 = vpop.eup %4851  ;;  %4462 = vmatpush3.xpose.msk.msra.mxu0 %vm366_vm3, %v690_v2  ;;  %4463 = vmatprep.mubr.msk.f32.mxu0 %vm5055_vm2, %v5054_v25 }
 0x3b8   :  { %v540_v4 = vmul.f32 %v4852_v3, %v4848_v59  ;;  %4471 = vmatprep.subr.mxu0 %v5054_v25 }
 0x3ba   :  { %4459 = vmatmul.mubr.msk.f32.vlgmr.msra.gmra.mrb[8].mxu1 %vm366_vm3, %v540_v4  ;;  %4464 = vmatmul.mubr.msk.f32.vlgmr.msra.gmra.mrb[4].mxu0 %vm366_vm3, %v688_v5 }
 0x3bb   :  { %4467 = vmatpush3.xpose.msk.msra.mxu1 %vm366_vm3, %v768_v61  ;;  %4468 = vmatprep.mubr.msk.f32.mxu1 %vm5055_vm2, %v5054_v25 }
 0x3bc   :  { %4476 = vmatprep.subr.mxu1 %v5054_v25  ;;  %4473 = vmatprep.mubr.msk.f32.mxu0 %vm5055_vm2, %v5054_v25 }
 0x3be   :  { %4469 = vmatmul.mubr.msk.f32.vlgmr.msra.gmra.mrb[10].mxu1 %vm366_vm3, %v766_v6 }
 0x3bf   :  { %4478 = vmatprep.mubr.msk.f32.mxu1 %vm5055_vm2, %v5054_v25 }
 0x489   :  { %v5293_v7 = vpop.f32.mrb[2].mxu0 }
 0x48a   :  { %v4455_v8 = vpop.f32.mrb[3].mxu0 }
 0x48d   :  { %v5295_v9 = vpop.f32.mrb[8].mxu1  ;;  %v761_v10 = vpop.f32.mrb[4].mxu0 }
 0x48e   :  { %v762_v11 = vadd.f32 %v761_v10, %v5259_v41  ;;  %v4460_v12 = vpop.f32.mrb[9].mxu1  ;;  %v4465_v13 = vpop.f32.mrb[5].mxu0 }
 0x490   :  { %v843_v14 = vsel %vm366_vm3, %v762_v11, -inf }
 0x491   :  { %844 = vmax.xlane.f32.xlu1 %v843_v14  ;;  %v839_v15 = vpop.f32.mrb[10].mxu1 }
 0x492   :  { %v840_v16 = vadd.f32 %v839_v15, %v5262_v45  ;;  %v4470_v17 = vpop.f32.mrb[11].mxu1 }
 0x494   :  { %v846_v19 = vsel %vm366_vm3, %v840_v16, -inf }
 0x495   :  { %847 = vmax.xlane.f32.xlu0 %v846_v19 }
 0x4a2   :  { %943 = vrot.lane.b32.xlu1 %v5251_v40, %s5056_s11 }
 0x4a6   :  { %1021 = vrot.lane.b32.xlu1 %v5233_v36, %s5057_s9 }
 0x4ab   :  { %866 = vrot.lane.b32.xlu0 %v5223_v31, %s5056_s11 }
 0x51e   :  { %v845_v20 = vpop.xlane.xlu1 %844 }
 0x51f   :  { %v849_v21 = vsub.f32 %v762_v11, %v845_v20 }
 0x521   :  { %v851_v22 = vmul.f32 1.442695, %v849_v21 }
 0x522   :  { %v944_v23 = vpop.permute.xlu1 %943  ;;  %v848_v26 = vpop.xlane.xlu0 %847 }
 0x523   :  { %4853 = vpow2.f32 %v851_v22  ;;  %v850_v27 = vsub.f32 %v840_v16, %v848_v26  ;;  %4477 = vmatpush3.msra.mxu1 %v944_v23 }
 0x524   :  { %4486 = vmatprep.subr.mxu1 %v5054_v25 }
 0x525   :  { %v853_v28 = vmul.f32 1.442695, %v850_v27 }
 0x526   :  { %v867_v29 = vpop.permute.xlu0 %866  ;;  %v1022_v35 = vpop.permute.xlu1 %1021 }
 0x527   :  { %4855 = vpow2.f32 %v853_v28  ;;  %4472 = vmatpush3.msra.mxu0 %v867_v29 }
 0x528   :  { %4481 = vmatprep.subr.mxu0 %v5054_v25 }
 0x52d   :  { %v4854_v30 = vpop.eup %4853 }
 0x52e   :  { %v855_v32 = vsel %vm366_vm3, %v4854_v30, 0.0 }
 0x52f   :  { %856 = vadd.xlane.f32.xlu0 %v855_v32 }
 0x531   :  { %v4856_v33 = vpop.eup %4855 }
 0x532   :  { %v858_v34 = vsel %vm366_vm3, %v4856_v33, 0.0 }
 0x533   :  { %859 = vadd.xlane.f32.xlu1 %v858_v34 }
 0x544   :  { %1019 = vrot.lane.b32.xlu1 %v5237_v37, %s5057_s9 }
 0x545   :  { %1099 = vrot.lane.b32.xlu0 %v5240_v38, %s5057_s9 }
 0x549   :  { %1097 = vrot.lane.b32.xlu0 %v5248_v39, %s5057_s9 }
 0x5bc   :  { %v857_v42 = vpop.xlane.xlu0 %856 }
 0x5bd   :  { %4857 = vrcp.f32 %v857_v42 }
 0x5c0   :  { %v860_v43 = vpop.xlane.xlu1 %859  ;;  %v1100_v48 = vpop.permute.xlu0 %1099 }
 0x5c1   :  { %4859 = vrcp.f32 %v860_v43 }
 0x5c4   :  { %v1020_v50 = vpop.permute.xlu1 %1019  ;;  %v1098_v51 = vpop.permute.xlu0 %1097 }
 0x5c7   :  { %v4858_v44 = vpop.eup %4857 }
 0x5c8   :  { %v863_v46 = vmul.f32 %v4858_v44, %v4854_v30 }
 0x5ca   :  { %4474 = vmatmul.mubr.msk.f32.vlgmr.msra.gmra.mrb[6].mxu0 %vm366_vm3, %v863_v46 }
 0x5cb   :  { %v4860_v47 = vpop.eup %4859  ;;  %4482 = vmatpush3.xpose.msk.msra.mxu0 %vm366_vm3, %v1022_v35  ;;  %4483 = vmatprep.mubr.msk.f32.mxu0 %vm5055_vm2, %v5054_v25 }
 0x5cc   :  { %v864_v49 = vmul.f32 %v4860_v47, %v4856_v33  ;;  %4491 = vmatprep.subr.mxu0 %v5054_v25 }
 0x5ce   :  { %4479 = vmatmul.mubr.msk.f32.vlgmr.msra.gmra.mrb[12].mxu1 %vm366_vm3, %v864_v49  ;;  %4484 = vmatmul.mubr.msk.f32.vlgmr.msra.gmra.mrb[8].mxu0 %vm366_vm3, %v1020_v50 }
 0x5cf   :  { %4487 = vmatpush3.xpose.msk.msra.mxu1 %vm366_vm3, %v1100_v48  ;;  %4488 = vmatprep.mubr.msk.f32.mxu1 %vm5055_vm2, %v5054_v25 }
 0x5d0   :  { %4496 = vmatprep.subr.mxu1 %v5054_v25  ;;  %4493 = vmatprep.mubr.msk.f32.mxu0 %vm5055_vm2, %v5054_v25 }
 0x5d2   :  { %4489 = vmatmul.mubr.msk.f32.vlgmr.msra.gmra.mrb[14].mxu1 %vm366_vm3, %v1098_v51 }
 0x5d3   :  { %4498 = vmatprep.mubr.msk.f32.mxu1 %vm5055_vm2, %v5054_v25 }
 0x69d   :  { %v5333_v52 = vpop.f32.mrb[6].mxu0 }
 0x69e   :  { %v4475_v53 = vpop.f32.mrb[7].mxu0 }
 0x6a1   :  { %v5335_v54 = vpop.f32.mrb[12].mxu1  ;;  %v1093_v55 = vpop.f32.mrb[8].mxu0 }
 0x6a2   :  { %v1094_v56 = vadd.f32 %v1093_v55, %v5259_v41  ;;  %v4480_v57 = vpop.f32.mrb[13].mxu1  ;;  %v4485_v58 = vpop.f32.mrb[9].mxu0 }
 0x6a4   :  { %v1175_v59 = vsel %vm366_vm3, %v1094_v56, -inf }
 0x6a5   :  { %1176 = vmax.xlane.f32.xlu1 %v1175_v59  ;;  %v1171_v60 = vpop.f32.mrb[14].mxu1 }
 0x6a6   :  { %v1172_v61 = vadd.f32 %v1171_v60, %v5262_v45  ;;  %v4490_v62 = vpop.f32.mrb[15].mxu1  ;;  %v1712_v60 = vld [vmem:[#allocation7 + $0x8] sm:$0xff] }
 0x6a7   :  { %v1713_v62 = vld [vmem:[#allocation7 + $0x10] sm:$0xff] }
 0x6a8   :  { %v1178_v63 = vsel %vm366_vm3, %v1172_v61, -inf }
 0x6a9   :  { %1179 = vmax.xlane.f32.xlu0 %v1178_v63  ;;  %v1714_v63 = vld [vmem:[#allocation7 + $0x18] sm:$0xff] }
 0x6b6   :  { %1273 = vrot.lane.b32.xlu1 %v5251_v40, %s5057_s9 }
 0x6ba   :  { %1351 = vrot.lane.b32.xlu1 %v5233_v36, %s5058_s10 }
 0x6bf   :  { %1197 = vrot.lane.b32.xlu0 %v5223_v31, %s5057_s9 }
 0x732   :  { %v1177_v0 = vpop.xlane.xlu1 %1176 }
 0x733   :  { %v1181_v1 = vsub.f32 %v1094_v56, %v1177_v0  ;;  %v4744_v0 = vpack.c.bf16 %v1714_v63, %v1713_v62 }
 0x735   :  { %v1183_v2 = vmul.f32 1.442695, %v1181_v1 }
 0x736   :  { %v1274_v3 = vpop.permute.xlu1 %1273  ;;  %v1180_v4 = vpop.xlane.xlu0 %1179 }
 0x737   :  { %4861 = vpow2.f32 %v1183_v2  ;;  %v1182_v5 = vsub.f32 %v1172_v61, %v1180_v4  ;;  %4497 = vmatpush3.msra.mxu1 %v1274_v3 }
 0x738   :  { %4506 = vmatprep.subr.mxu1 %v5054_v25 }
 0x739   :  { %v1185_v6 = vmul.f32 1.442695, %v1182_v5 }
 0x73a   :  { %v1198_v8 = vpop.permute.xlu0 %1197  ;;  %v1352_v13 = vpop.permute.xlu1 %1351 }
 0x73b   :  { %4863 = vpow2.f32 %v1185_v6  ;;  %4492 = vmatpush3.msra.mxu0 %v1198_v8 }
 0x73c   :  { %4501 = vmatprep.subr.mxu0 %v5054_v25 }
 0x741   :  { %v4862_v36 = vpop.eup %4861 }
 0x742   :  { %v1187_v10 = vsel %vm366_vm3, %v4862_v36, 0.0 }
 0x743   :  { %1188 = vadd.xlane.f32.xlu0 %v1187_v10 }
 0x745   :  { %v4864_v11 = vpop.eup %4863 }
 0x746   :  { %v1190_v12 = vsel %vm366_vm3, %v4864_v11, 0.0 }
 0x747   :  { %1191 = vadd.xlane.f32.xlu1 %v1190_v12 }
 0x758   :  { %1349 = vrot.lane.b32.xlu1 %v5237_v37, %s5058_s10 }
 0x759   :  { %1429 = vrot.lane.b32.xlu0 %v5240_v38, %s5058_s10 }
 0x75d   :  { %1427 = vrot.lane.b32.xlu0 %v5248_v39, %s5058_s10 }
 0x7d0   :  { %v1189_v14 = vpop.xlane.xlu0 %1188 }
 0x7d1   :  { %4865 = vrcp.f32 %v1189_v14 }
 0x7d4   :  { %v1192_v15 = vpop.xlane.xlu1 %1191  ;;  %v1430_v20 = vpop.permute.xlu0 %1429 }
 0x7d5   :  { %4867 = vrcp.f32 %v1192_v15 }
 0x7d8   :  { %v1350_v38 = vpop.permute.xlu1 %1349  ;;  %v1428_v39 = vpop.permute.xlu0 %1427 }
 0x7db   :  { %v4866_v16 = vpop.eup %4865 }
 0x7dc   :  { %v1195_v17 = vmul.f32 %v4866_v16, %v4862_v36 }
 0x7de   :  { %4494 = vmatmul.mubr.msk.f32.vlgmr.msra.gmra.mrb[10].mxu0 %vm366_vm3, %v1195_v17 }
 0x7df   :  { %v4868_v19 = vpop.eup %4867  ;;  %4502 = vmatpush3.xpose.msk.msra.mxu0 %vm366_vm3, %v1352_v13  ;;  %4503 = vmatprep.mubr.msk.f32.mxu0 %vm5055_vm2, %v5054_v25 }
 0x7e0   :  { %v1196_v37 = vmul.f32 %v4868_v19, %v4864_v11  ;;  %4511 = vmatprep.subr.mxu0 %v5054_v25 }
 0x7e2   :  { %4499 = vmatmul.mubr.msk.f32.vlgmr.msra.gmra.mrb[16].mxu1 %vm366_vm3, %v1196_v37  ;;  %4504 = vmatmul.mubr.msk.f32.vlgmr.msra.gmra.mrb[12].mxu0 %vm366_vm3, %v1350_v38 }
 0x7e3   :  { %4507 = vmatpush3.xpose.msk.msra.mxu1 %vm366_vm3, %v1430_v20  ;;  %4508 = vmatprep.mubr.msk.f32.mxu1 %vm5055_vm2, %v5054_v25 }
 0x7e4   :  { %4516 = vmatprep.subr.mxu1 %v5054_v25  ;;  %4513 = vmatprep.mubr.msk.f32.mxu0 %vm5055_vm2, %v5054_v25 }
 0x7e6   :  { %4509 = vmatmul.mubr.msk.f32.vlgmr.msra.gmra.mrb[18].mxu1 %vm366_vm3, %v1428_v39 }
 0x7e7   :  { %4518 = vmatprep.mubr.msk.f32.mxu1 %vm5055_vm2, %v5054_v25 }
 0x8b1   :  { %v1269_v21 = vpop.f32.mrb[10].mxu0 }
 0x8b2   :  { %v4495_v22 = vpop.f32.mrb[11].mxu0 }
 0x8b5   :  { %v1345_v23 = vpop.f32.mrb[16].mxu1  ;;  %v1423_v26 = vpop.f32.mrb[12].mxu0 }
 0x8b6   :  { %v1424_v27 = vadd.f32 %v1423_v26, %v5259_v41  ;;  %v4500_v28 = vpop.f32.mrb[17].mxu1  ;;  %v4505_v29 = vpop.f32.mrb[13].mxu0 }
 0x8b8   :  { %v1505_v30 = vsel %vm366_vm3, %v1424_v27, -inf }
 0x8b9   :  { %1506 = vmax.xlane.f32.xlu1 %v1505_v30  ;;  %v1501_v32 = vpop.f32.mrb[18].mxu1 }
 0x8ba   :  { %v1502_v33 = vadd.f32 %v1501_v32, %v5262_v45  ;;  %v4510_v34 = vpop.f32.mrb[19].mxu1 }
 0x8bc   :  { %v1508_v35 = vsel %vm366_vm3, %v1502_v33, -inf }
 0x8bd   :  { %1509 = vmax.xlane.f32.xlu0 %v1508_v35  ;;  %v1854_v35 = vld [vmem:[#allocation8 + $0x8] sm:$0xff] }
 0x946   :  { %v1507_v42 = vpop.xlane.xlu1 %1506 }
 0x947   :  { %v1511_v43 = vsub.f32 %v1424_v27, %v1507_v42 }
 0x949   :  { %v1513_v44 = vmul.f32 1.442695, %v1511_v43  ;;  %v1855_v43 = vld [vmem:[#allocation8 + $0x10] sm:$0xff] }
 0x94a   :  { %v1510_v46 = vpop.xlane.xlu0 %1509 }
 0x94b   :  { %4869 = vpow2.f32 %v1513_v44  ;;  %v1512_v47 = vsub.f32 %v1502_v33, %v1510_v46  ;;  %v1856_v44 = vld [vmem:[#allocation8 + $0x18] sm:$0xff] }
 0x94c   :  { %v4752_v46 = vpack.c.bf16 %v1856_v44, %v1855_v43  ;;  %v4205_v43 = vld [vmem:[%s5781_s2 + $0xa8] sm:$0xff] }
 0x94d   :  { %v1515_v48 = vmul.f32 1.442695, %v1512_v47  ;;  %v1948_v47 = vld [vmem:[%s5784_s5] sm:$0xff] }
 0x94f   :  { %4871 = vpow2.f32 %v1515_v48  ;;  %v1949_v48 = vld [vmem:[%s5784_s5 + $0x8] sm:$0xff] }
 0x955   :  { %v4870_v49 = vpop.eup %4869 }
 0x956   :  { %v1517_v50 = vsel %vm366_vm3, %v4870_v49, 0.0 }
 0x957   :  { %1518 = vadd.xlane.f32.xlu0 %v1517_v50  ;;  %v4756_v50 = vpack.c.bf16 %v1949_v48, %v1948_v47  ;;  %v4191_v47 = vld [vmem:[%s5781_s2 + $0x78] sm:$0xff]  ;;  %v4206_v48 = vld [vmem:[%s5781_s2 + $0xb0] sm:$0xff] }
 0x959   :  { %v4872_v51 = vpop.eup %4871 }
 0x95a   :  { %v1520_v53 = vsel %vm366_vm3, %v4872_v51, 0.0 }
 0x95b   :  { %1521 = vadd.xlane.f32.xlu1 %v1520_v53 }
 0x96c   :  { %1603 = vrot.lane.b32.xlu1 %v5251_v40, %s5058_s10 }
 0x96d   :  { %1527 = vrot.lane.b32.xlu0 %v5223_v31, %s5058_s10 }
 0x970   :  { %1681 = vrot.lane.b32.xlu1 %v5333_v52, %s5047_s12 }
 0x971   :  { %1683 = vrot.lane.b32.xlu0 %v5335_v54, %s5047_s12  ;;  %v1711_v54 = vld [vmem:[#allocation7] sm:$0xff] }
 0x972   :  { %v4740_v61 = vpack.c.bf16 %v1712_v60, %v1711_v54 }
 0x974   :  { %1689 = vrot.lane.b32.xlu1 %v1269_v21, %s5059_s13 }
 0x975   :  { %1691 = vrot.lane.b32.xlu0 %v1345_v23, %s5059_s13 }
 0x9e4   :  { %v1519_v55 = vpop.xlane.xlu0 %1518 }
 0x9e5   :  { %4873 = vrcp.f32 %v1519_v55  ;;  %v1952_v55 = vld [vmem:[%s5784_s5 + $0x20] sm:$0xff] }
 0x9e8   :  { %v1522_v56 = vpop.xlane.xlu1 %1521  ;;  %v1528_v57 = vpop.permute.xlu0 %1527 }
 0x9e9   :  { %4875 = vrcp.f32 %v1522_v56  ;;  %4512 = vmatpush3.msra.mxu0 %v1528_v57  ;;  %v1953_v56 = vld [vmem:[%s5784_s5 + $0x28] sm:$0xff] }
 0x9ea   :  { %4741 = vmatprep.subr.bf16.mxu0 %v4740_v61  ;;  %v4764_v57 = vpack.c.bf16 %v1953_v56, %v1952_v55  ;;  %v4197_v55 = vld [vmem:[%s5781_s2 + $0x88] sm:$0xff] }
 0x9ec   :  { %v1604_v40 = vpop.permute.xlu1 %1603  ;;  %v1684_v6 = vpop.permute.xlu0 %1683 }
 0x9ed   :  { %4517 = vmatpush3.msra.mxu1 %v1604_v40  ;;  %v1704_v14 = vsel %vm366_vm3, %v5295_v9, %v1684_v6  ;;  %v1954_v6 = vld [vmem:[%s5784_s5 + $0x30] sm:$0xff] }
 0x9ef   :  { %v4874_v31 = vpop.eup %4873 }
 0x9f0   :  { %v1525_v58 = vmul.f32 %v4874_v31, %v4870_v49  ;;  %v1682_v5 = vpop.permute.xlu1 %1681  ;;  %v1692_v10 = vpop.permute.xlu0 %1691  ;;  %v1950_v49 = vld [vmem:[%s5784_s5 + $0x10] sm:$0xff] }
 0x9f1   :  { %v1703_v36 = vsel %vm366_vm3, %v5293_v7, %v1682_v5  ;;  %v1707_v15 = vsel %vm1705_vm5, %v1704_v14, %v1692_v10  ;;  %v4169_v7 = vld [vmem:[%s5785_s6 + $0x3] ss:$0 sm:$0xff]  ;;  %v4177_v10 = vld [vmem:[%s5785_s6 + $0x6] ss:$0 sm:$0xff] }
 0x9f2   :  { %4514 = vmatmul.mubr.msk.f32.vlgmr.msra.gmra.mrb[14].mxu0 %vm366_vm3, %v1525_v58 }
 0x9f3   :  { %v4876_v52 = vpop.eup %4875  ;;  %4743 = vmatpush3.bf16.msra.mxu0 %v4740_v61  ;;  %v4173_v61 = vld [vmem:[%s5785_s6 + $0x4] ss:$0 sm:$0xff] }
 0x9f4   :  { %v1526_v59 = vmul.f32 %v4876_v52, %v4872_v51  ;;  %4745 = vmatprep.subr.bf16.mxu0 %v4744_v0  ;;  %v1690_v8 = vpop.permute.xlu1 %1689  ;;  %v1951_v51 = vld [vmem:[%s5784_s5 + $0x18] sm:$0xff] }
 0x9f5   :  { %v1706_v11 = vsel %vm1705_vm5, %v1703_v36, %v1690_v8  ;;  %v4760_v53 = vpack.c.bf16 %v1951_v51, %v1950_v49  ;;  %v1955_v8 = vld [vmem:[%s5784_s5 + $0x38] sm:$0xff] }
 0x9f6   :  { %4519 = vmatmul.mubr.msk.f32.vlgmr.msra.gmra.mrb[20].mxu1 %vm366_vm3, %v1526_v59  ;;  %v4768_v36 = vpack.c.bf16 %v1955_v8, %v1954_v6 }
 0x9f7   :  { %4747 = vmatpush3.bf16.msra.mxu0 %v4744_v0 }
 0x9f8   :  { %4757 = vmatprep.subr.bf16.mxu0 %v4756_v50 }
 0xac5   :  { %v1599_v1 = vpop.f32.mrb[14].mxu0 }
 0xac6   :  { %1697 = vrot.lane.b32.xlu1 %v1599_v1, %s5060_s14  ;;  %v4515_v2 = vpop.f32.mrb[15].mxu0 }
 0xac7   :  { %v4175_v2 = vld [vmem:[%s5785_s6 + $0x5] ss:$0 sm:$0xff] }
 0xac9   :  { %v1675_v3 = vpop.f32.mrb[20].mxu1 }
 0xaca   :  { %1699 = vrot.lane.b32.xlu0 %v1675_v3, %s5060_s14  ;;  %v4520_v4 = vpop.f32.mrb[21].mxu1 }
 0xb38   :  { %v1698_v12 = vpop.permute.xlu1 %1697 }
 0xb39   :  { %v1709_v13 = vsel %vm1708_vm4, %v1706_v11, %v1698_v12 }
 0xb3a   :  { %4529 = vmatprep.mubr.msk.f32.mxu0 %vm108_vm1, %v1709_v13 }
 0xb3c   :  { %v1700_v16 = vpop.permute.xlu0 %1699 }
 0xb3d   :  { %v1710_v17 = vsel %vm1708_vm4, %v1707_v15, %v1700_v16 }
 0xb3e   :  { %4530 = vmatmul.mubr.msk.f32.vlgmr.msra.gmra.mrb[16].mxu0 %vm108_vm1, %v1710_v17  ;;  %v4181_v17 = vld [vmem:[%s5785_s6 + $0x7] ss:$0 sm:$0xff] }
 0xb3f   :  { %4759 = vmatpush3.bf16.msra.mxu0 %v4756_v50  ;;  %v4207_v50 = vld [vmem:[%s5781_s2 + $0xb8] sm:$0xff] }
 0xb40   :  { %4761 = vmatprep.subr.bf16.mxu0 %v4760_v53  ;;  %v4792_v51 = vpack.c.bf16 %v4207_v50, %v4206_v48 }
 0xb43   :  { %4763 = vmatpush3.bf16.msra.mxu0 %v4760_v53  ;;  %v4196_v53 = vld [vmem:[%s5781_s2 + $0x80] sm:$0xff] }
 0xb44   :  { %4765 = vmatprep.subr.bf16.mxu0 %v4764_v57  ;;  %v4780_v56 = vpack.c.bf16 %v4197_v55, %v4196_v53 }
 0xb47   :  { %4767 = vmatpush3.bf16.msra.mxu0 %v4764_v57 }
 0xb48   :  { %4769 = vmatprep.subr.bf16.mxu0 %v4768_v36 }
 0xb4b   :  { %4771 = vmatpush3.bf16.msra.mxu0 %v4768_v36  ;;  %v4209_v36 = vld [vmem:[%s5785_s6 + $0xc] ss:$0 sm:$0xff] }
 0xc11   :  { %v4531_v19 = vpop.f32.mrb[16].mxu0 }
 0xc12   :  { %v1801_v20 = vadd.f32 %v4531_v19, %v4169_v7  ;;  %v1795_v37 = vpop.f32.mrb[17].mxu0 }
 0xc13   :  { %v1796_v38 = vadd.f32 %v4169_v7, %v1795_v37 }
 0xc14   :  { %v1805_v39 = vadd.f32 %v1801_v20, %v5204_v24 }
 0xc15   :  { %v1804_v21 = vadd.f32 %v1796_v38, %v5192_v18  ;;  %v1853_v18 = vld [vmem:[#allocation8] sm:$0xff] }
 0xc16   :  { %v1809_v9 = vsel %vm108_vm1, %v1805_v39, 0.0  ;;  %v4748_v42 = vpack.c.bf16 %v1854_v35, %v1853_v18  ;;  %v4189_v18 = vld [vmem:[%s5781_s2 + $0x68] sm:$0xff] }
 0xc17   :  { %1810 = vadd.xlane.f32.xlu0 %v1809_v9  ;;  %v1806_v22 = vsel %vm108_vm1, %v1804_v21, 0.0 }
 0xc18   :  { %1807 = vadd.xlane.f32.xlu1 %v1806_v22  ;;  %4749 = vmatprep.subr.bf16.mxu1 %v4748_v42 }
 0xc19   :  { %4751 = vmatpush3.bf16.msra.mxu1 %v4748_v42  ;;  %v4204_v42 = vld [vmem:[%s5781_s2 + $0xa0] sm:$0xff] }
 0xc1a   :  { %4753 = vmatprep.subr.bf16.mxu1 %v4752_v46  ;;  %v4788_v44 = vpack.c.bf16 %v4205_v43, %v4204_v42 }
 0xc1c   :  { %4789 = vmatprep.subr.bf16.mxu0 %v4788_v44 }
 0xc1d   :  { %4755 = vmatpush3.bf16.msra.mxu1 %v4752_v46  ;;  %v4190_v46 = vld [vmem:[%s5781_s2 + $0x70] sm:$0xff] }
 0xc1e   :  { %v4776_v49 = vpack.c.bf16 %v4191_v47, %v4190_v46 }
 0xca4   :  { %v1811_v23 = vpop.xlane.xlu0 %1810 }
 0xca5   :  { %v1814_v26 = vmul.f32 0.03125, %v1811_v23  ;;  %v1808_v27 = vpop.xlane.xlu1 %1807 }
 0xca6   :  { %v1813_v28 = vmul.f32 0.03125, %v1808_v27 }
 0xca7   :  { %v1816_v29 = vsub.f32 %v1805_v39, %v1814_v26 }
 0xca8   :  { %v1815_v30 = vsub.f32 %v1804_v21, %v1813_v28 }
 0xca9   :  { %v1818_v32 = vmul.f32 %v1816_v29, %v1816_v29 }
 0xcaa   :  { %v1817_v33 = vmul.f32 %v1815_v30, %v1815_v30 }
 0xcab   :  { %v1822_v34 = vsel %vm108_vm1, %v1818_v32, 0.0 }
 0xcac   :  { %1823 = vadd.xlane.f32.xlu1 %v1822_v34  ;;  %v1819_v24 = vsel %vm108_vm1, %v1817_v33, 0.0 }
 0xcad   :  { %1820 = vadd.xlane.f32.xlu0 %v1819_v24  ;;  %v4188_v24 = vld [vmem:[%s5781_s2 + $0x60] sm:$0xff] }
 0xcae   :  { %v4772_v35 = vpack.c.bf16 %v4189_v18, %v4188_v24 }
 0xcb0   :  { %4773 = vmatprep.subr.bf16.mxu1 %v4772_v35 }
 0xd39   :  { %v1824_v40 = vpop.xlane.xlu1 %1823 }
 0xd3a   :  { %v1826_v31 = vmul.f32 0.03125, %v1824_v40  ;;  %v1821_v58 = vpop.xlane.xlu0 %1820 }
 0xd3b   :  { %v1825_v52 = vmul.f32 0.03125, %v1821_v58 }
 0xd3c   :  { %v1828_v59 = vadd.f32 1e-05, %v1826_v31 }
 0xd3d   :  { %v1827_v54 = vadd.f32 1e-05, %v1825_v52 }
 0xd3e   :  { %4877 = vrsqrt.f32 %v1828_v59 }
 0xd3f   :  { %4879 = vrsqrt.f32 %v1827_v54 }
 0xd48   :  { %v4878_v60 = vpop.eup %4877 }
 0xd49   :  { %v4880_v62 = vpop.eup %4879  ;;  %v1832_v63 = vmul.f32 %v4878_v60, %v1816_v29  ;;  %v4185_v60 = vld [vmem:[%s5785_s6 + $0x8] ss:$0 sm:$0xff] }
 0xd4a   :  { %v1831_v0 = vmul.f32 %v4880_v62, %v1815_v30 }
 0xd4b   :  { %v1842_v1 = vmul.f32 %v4173_v61, %v1832_v63 }
 0xd4c   :  { %v1841_v3 = vmul.f32 %v4173_v61, %v1831_v0 }
 0xd4d   :  { %v1852_v5 = vadd.f32 %v4175_v2, %v1842_v1  ;;  %v4187_v1 = vld [vmem:[%s5785_s6 + $0x9] ss:$0 sm:$0xff] }
 0xd4e   :  { %v1851_v4 = vadd.f32 %v4175_v2, %v1841_v3  ;;  %v4198_v3 = vld [vmem:[%s5781_s2 + $0x90] sm:$0xff] }
 0xd50   :  { %4540 = vmatprep.mubr.msk.f32.mxu1 %vm108_vm1, %v1851_v4 }
 0xd51   :  { %4541 = vmatmul.mubr.msk.f32.vlgmr.msra.gmra.mrb[22].mxu1 %vm108_vm1, %v1852_v5 }
 0xd52   :  { %4775 = vmatpush3.bf16.msra.mxu1 %v4772_v35 }
 0xd53   :  { %4777 = vmatprep.subr.bf16.mxu1 %v4776_v49 }
 0xd56   :  { %4779 = vmatpush3.bf16.msra.mxu1 %v4776_v49 }
 0xd57   :  { %4781 = vmatprep.subr.bf16.mxu1 %v4780_v56 }
 0xe24   :  { %v4542_v11 = vpop.f32.mrb[22].mxu1 }
 0xe25   :  { %v1943_v12 = vadd.f32 %v4542_v11, %v4177_v10  ;;  %v1937_v13 = vpop.f32.mrb[23].mxu1 }
 0xe26   :  { %v1938_v14 = vadd.f32 %v4177_v10, %v1937_v13 }
 0xe27   :  { %v1947_v16 = vmax.f32 %v1943_v12, 0.0 }
 0xe28   :  { %v1946_v15 = vmax.f32 %v1938_v14, 0.0 }
 0xe2a   :  { %4559 = vmatprep.mubr.msk.f32.mxu0 %vm1964_vm6, %v1946_v15  ;;  %v4201_v15 = vld [vmem:[%s5785_s6 + $0xb] ss:$0 sm:$0xff] }
 0xe2b   :  { %4560 = vmatmul.mubr.msk.f32.vlgmr.msra.gmra.mrb[18].mxu0 %vm1964_vm6, %v1947_v16 }
 0xe2c   :  { %4791 = vmatpush3.bf16.msra.mxu0 %v4788_v44 }
 0xe2d   :  { %4793 = vmatprep.subr.bf16.mxu0 %v4792_v51 }
 0xe30   :  { %4795 = vmatpush3.bf16.msra.mxu0 %v4792_v51 }
 0xe31   :  { %4605 = vmatprep.subr.mxu0 %v5054_v25 }
 0xefe   :  { %v4561_v7 = vpop.f32.mrb[18].mxu0 }
 0xeff   :  { %v2043_v19 = vadd.f32 %v4561_v7, %v4181_v17  ;;  %v2037_v20 = vpop.f32.mrb[19].mxu0  ;;  %v4193_v7 = vld [vmem:[%s5785_s6 + $0xa] ss:$0 sm:$0xff] }
 0xf00   :  { %v2038_v37 = vadd.f32 %v4181_v17, %v2037_v20 }
 0xf01   :  { %v2047_v38 = vadd.f32 %v2043_v19, %v1852_v5 }
 0xf02   :  { %v2046_v39 = vadd.f32 %v2038_v37, %v1851_v4  ;;  %v4199_v4 = vld [vmem:[%s5781_s2 + $0x98] sm:$0xff] }
 0xf03   :  { %v2051_v21 = vsel %vm108_vm1, %v2047_v38, 0.0  ;;  %v4784_v8 = vpack.c.bf16 %v4199_v4, %v4198_v3 }
 0xf04   :  { %2052 = vadd.xlane.f32.xlu1 %v2051_v21  ;;  %v2048_v9 = vsel %vm108_vm1, %v2046_v39, 0.0 }
 0xf05   :  { %2049 = vadd.xlane.f32.xlu0 %v2048_v9 }
 0xf91   :  { %v2053_v22 = vpop.xlane.xlu1 %2052 }
 0xf92   :  { %v2055_v23 = vmul.f32 0.03125, %v2053_v22  ;;  %v2050_v26 = vpop.xlane.xlu0 %2049 }
 0xf93   :  { %v2054_v27 = vmul.f32 0.03125, %v2050_v26 }
 0xf94   :  { %v2057_v28 = vsub.f32 %v2047_v38, %v2055_v23 }
 0xf95   :  { %v2056_v29 = vsub.f32 %v2046_v39, %v2054_v27 }
 0xf96   :  { %v2059_v30 = vmul.f32 %v2057_v28, %v2057_v28 }
 0xf97   :  { %v2058_v32 = vmul.f32 %v2056_v29, %v2056_v29 }
 0xf98   :  { %v2063_v33 = vsel %vm108_vm1, %v2059_v30, 0.0 }
 0xf99   :  { %2064 = vadd.xlane.f32.xlu1 %v2063_v33  ;;  %v2060_v34 = vsel %vm108_vm1, %v2058_v32, 0.0 }
 0xf9a   :  { %2061 = vadd.xlane.f32.xlu0 %v2060_v34 }
0x1026   :  { %v2065_v57 = vpop.xlane.xlu1 %2064 }
0x1027   :  { %v2067_v40 = vmul.f32 0.03125, %v2065_v57  ;;  %v2062_v31 = vpop.xlane.xlu0 %2061 }
0x1028   :  { %v2066_v58 = vmul.f32 0.03125, %v2062_v31 }
0x1029   :  { %v2069_v52 = vadd.f32 1e-05, %v2067_v40 }
0x102a   :  { %v2068_v59 = vadd.f32 1e-05, %v2066_v58  ;;  %v5593_v58 = vld [vmem:[#allocation5] sm:$0xff] }
0x102b   :  { %4881 = vrsqrt.f32 %v2069_v52 }
0x102c   :  { %4883 = vrsqrt.f32 %v2068_v59 }
0x1035   :  { %v4882_v54 = vpop.eup %4881 }
0x1036   :  { %v4884_v61 = vpop.eup %4883  ;;  %v2073_v62 = vmul.f32 %v4882_v54, %v2057_v28 }
0x1037   :  { %v2072_v63 = vmul.f32 %v4884_v61, %v2056_v29 }
0x1038   :  { %v2083_v0 = vmul.f32 %v4185_v60, %v2073_v62  ;;  %v5597_v62 = vld [vmem:[#allocation5 + $0x8] sm:$0xff] }
0x1039   :  { %v2082_v2 = vmul.f32 %v4185_v60, %v2072_v63 }
0x103a   :  { %v5501_v6 = vadd.f32 %v4187_v1, %v2083_v0 }
0x103b   :  { %v5499_v5 = vadd.f32 %v4187_v1, %v2082_v2 }
0x103d   :  { %4570 = vmatprep.mubr.msk.f32.mxu1 %vm108_vm1, %v5499_v5  ;;  %4592 = vmatprep.mubr.msk.f32.mxu0 %vm108_vm1, %v5499_v5 }
0x103e   :  { %4571 = vmatmul.mubr.msk.f32.vlgmr.msra.gmra.mrb[24].mxu1 %vm108_vm1, %v5501_v6  ;;  %4593 = vmatmul.mubr.msk.f32.vlgmr.msra.gmra.mrb[20].mxu0 %vm108_vm1, %v5501_v6 }
0x103f   :  { %4783 = vmatpush3.bf16.msra.mxu1 %v4780_v56  ;;  %4581 = vmatprep.mubr.msk.f32.mxu1 %vm108_vm1, %v5499_v5 }
0x1040   :  { %4785 = vmatprep.subr.bf16.mxu1 %v4784_v8  ;;  %4607 = vmatprep.mubr.msk.f32.mxu0 %vm5055_vm2, %v5054_v25 }
0x1043   :  { %4787 = vmatpush3.bf16.msra.mxu1 %v4784_v8 }
0x1044   :  { %4595 = vmatprep.subr.mxu1 %v5054_v25 }
0x1046   :  { %4582 = vmatmul.mubr.msk.f32.vlgmr.msra.gmra.mrb[26].mxu1 %vm108_vm1, %v5501_v6 }
0x1047   :  { %4597 = vmatprep.mubr.msk.f32.mxu1 %vm5055_vm2, %v5054_v25 }
0x1111   :  { %v4572_v10 = vpop.f32.mrb[24].mxu1  ;;  %v4594_v11 = vpop.f32.mrb[20].mxu0 }
0x1112   :  { %v2179_v12 = vpop.f32.mrb[25].mxu1  ;;  %v2355_v13 = vpop.f32.mrb[21].mxu0  ;;  %v5548_v38 = vadd.f32 %v4572_v10, %v4193_v7  ;;  %v5551_v39 = vadd.f32 %v4594_v11, %v4209_v36 }
0x1113   :  { %v5523_v14 = vadd.f32 %v4209_v36, %v2355_v13  ;;  %v5537_v20 = vadd.f32 %v4193_v7, %v2179_v12 }
0x1115   :  { %4606 = vmatpush3.msra.mxu0 %v5523_v14 }
0x1116   :  { %4615 = vmatprep.subr.mxu0 %v5054_v25 }
0x1119   :  { %v4583_v16 = vpop.f32.mrb[26].mxu1 }
0x111a   :  { %v2267_v17 = vpop.f32.mrb[27].mxu1  ;;  %v5540_v37 = vadd.f32 %v4583_v16, %v4201_v15 }
0x111b   :  { %v5533_v19 = vadd.f32 %v4201_v15, %v2267_v17 }
0x111d   :  { %4596 = vmatpush3.xpose.msk.msra.mxu1 %vm366_vm3, %v5533_v19 }
0x111e   :  { %4600 = vmatprep.subr.mxu1 %v5054_v25 }
0x1120   :  { %4598 = vmatmul.mubr.msk.f32.vlgmr.msra.gmra.mrb[28].mxu1 %vm366_vm3, %v5537_v20 }
0x1121   :  { %4601 = vmatpush3.xpose.msk.msra.mxu1 %vm366_vm3, %v5540_v37  ;;  %4602 = vmatprep.mubr.msk.f32.mxu1 %vm5055_vm2, %v5054_v25 }
0x1122   :  { %4610 = vmatprep.subr.mxu1 %v5054_v25 }
0x1124   :  { %4603 = vmatmul.mubr.msk.f32.vlgmr.msra.gmra.mrb[30].mxu1 %vm366_vm3, %v5548_v38 }
0x1125   :  { %4611 = vmatpush3.msra.mxu1 %v5551_v39  ;;  %4612 = vmatprep.mubr.msk.f32.mxu1 %vm5055_vm2, %v5054_v25 }
0x1126   :  { %4620 = vmatprep.subr.mxu1 %v5054_v25 }
0x11f3   :  { %v2436_v21 = vpop.f32.mrb[28].mxu1 }
0x11f4   :  { %v2437_v9 = vadd.f32 %v2436_v21, %v5259_v41  ;;  %v4599_v22 = vpop.f32.mrb[29].mxu1 }
0x11f6   :  { %v2516_v23 = vsel %vm366_vm3, %v2437_v9, -inf }
0x11f7   :  { %2517 = vmax.xlane.f32.xlu0 %v2516_v23  ;;  %v2512_v26 = vpop.f32.mrb[30].mxu1 }
0x11f8   :  { %v2513_v27 = vadd.f32 %v2512_v26, %v5262_v45  ;;  %v4604_v28 = vpop.f32.mrb[31].mxu1 }
0x11fa   :  { %v2519_v29 = vsel %vm366_vm3, %v2513_v27, -inf }
0x11fb   :  { %2520 = vmax.xlane.f32.xlu1 %v2519_v29 }
0x120c   :  { %2764 = vrot.lane.b32.xlu1 %v5540_v37, %s5056_s11 }
0x1284   :  { %v2518_v30 = vpop.xlane.xlu0 %2517 }
0x1285   :  { %v2522_v32 = vsub.f32 %v2437_v9, %v2518_v30 }
0x1287   :  { %v2524_v33 = vmul.f32 1.442695, %v2522_v32 }
0x1288   :  { %v2521_v34 = vpop.xlane.xlu1 %2520 }
0x1289   :  { %4885 = vpow2.f32 %v2524_v33  ;;  %v2523_v41 = vsub.f32 %v2513_v27, %v2521_v34 }
0x128b   :  { %v2526_v24 = vmul.f32 1.442695, %v2523_v41 }
0x128c   :  { %v2765_v43 = vpop.permute.xlu1 %2764 }
0x128d   :  { %4887 = vpow2.f32 %v2526_v24 }
0x1293   :  { %v4886_v18 = vpop.eup %4885 }
0x1294   :  { %v2528_v35 = vsel %vm366_vm3, %v4886_v18, 0.0 }
0x1295   :  { %2529 = vadd.xlane.f32.xlu0 %v2528_v35 }
0x1297   :  { %v4888_v45 = vpop.eup %4887 }
0x1298   :  { %v2531_v42 = vsel %vm366_vm3, %v4888_v45, 0.0 }
0x1299   :  { %2532 = vadd.xlane.f32.xlu1 %v2531_v42 }
0x12aa   :  { %2684 = vrot.lane.b32.xlu1 %v5537_v20, %s5056_s11 }
0x12ab   :  { %2686 = vrot.lane.b32.xlu0 %v5533_v19, %s5056_s11 }
0x12af   :  { %2762 = vrot.lane.b32.xlu0 %v5548_v38, %s5056_s11 }
0x1322   :  { %v2530_v44 = vpop.xlane.xlu0 %2529 }
0x1323   :  { %4889 = vrcp.f32 %v2530_v44 }
0x1326   :  { %v2533_v46 = vpop.xlane.xlu1 %2532  ;;  %v2687_v49 = vpop.permute.xlu0 %2686 }
0x1327   :  { %4891 = vrcp.f32 %v2533_v46 }
0x132a   :  { %v2685_v53 = vpop.permute.xlu1 %2684  ;;  %v2763_v55 = vpop.permute.xlu0 %2762 }
0x132d   :  { %v4890_v47 = vpop.eup %4889 }
0x132e   :  { %v2536_v48 = vmul.f32 %v4890_v47, %v4886_v18 }
0x1330   :  { %4608 = vmatmul.mubr.msk.f32.vlgmr.msra.gmra.mrb[22].mxu0 %vm366_vm3, %v2536_v48 }
0x1331   :  { %v4892_v50 = vpop.eup %4891  ;;  %4616 = vmatpush3.xpose.msk.msra.mxu0 %vm366_vm3, %v2687_v49  ;;  %4617 = vmatprep.mubr.msk.f32.mxu0 %vm5055_vm2, %v5054_v25 }
0x1332   :  { %v2537_v51 = vmul.f32 %v4892_v50, %v4888_v45  ;;  %4625 = vmatprep.subr.mxu0 %v5054_v25 }
0x1334   :  { %4613 = vmatmul.mubr.msk.f32.vlgmr.msra.gmra.mrb[32].mxu1 %vm366_vm3, %v2537_v51  ;;  %4618 = vmatmul.mubr.msk.f32.vlgmr.msra.gmra.mrb[24].mxu0 %vm366_vm3, %v2685_v53 }
0x1335   :  { %4621 = vmatpush3.xpose.msk.msra.mxu1 %vm366_vm3, %v2765_v43  ;;  %4622 = vmatprep.mubr.msk.f32.mxu1 %vm5055_vm2, %v5054_v25 }
0x1336   :  { %4630 = vmatprep.subr.mxu1 %v5054_v25  ;;  %4627 = vmatprep.mubr.msk.f32.mxu0 %vm5055_vm2, %v5054_v25 }
0x1338   :  { %4623 = vmatmul.mubr.msk.f32.vlgmr.msra.gmra.mrb[34].mxu1 %vm366_vm3, %v2763_v55 }
0x1339   :  { %4632 = vmatprep.mubr.msk.f32.mxu1 %vm5055_vm2, %v5054_v25 }
0x1403   :  { %v5589_v56 = vpop.f32.mrb[22].mxu0 }
0x1404   :  { %v4609_v57 = vpop.f32.mrb[23].mxu0 }
0x1407   :  { %v5591_v40 = vpop.f32.mrb[32].mxu1  ;;  %v2758_v31 = vpop.f32.mrb[24].mxu0 }
0x1408   :  { %v2759_v52 = vadd.f32 %v5593_v58, %v2758_v31  ;;  %v4614_v59 = vpop.f32.mrb[33].mxu1  ;;  %v4619_v54 = vpop.f32.mrb[25].mxu0 }
0x140a   :  { %v2840_v60 = vsel %vm366_vm3, %v2759_v52, -inf }
0x140b   :  { %2841 = vmax.xlane.f32.xlu1 %v2840_v60  ;;  %v2836_v61 = vpop.f32.mrb[34].mxu1 }
0x140c   :  { %v2837_v63 = vadd.f32 %v5597_v62, %v2836_v61  ;;  %v4624_v0 = vpop.f32.mrb[35].mxu1 }
0x140e   :  { %v2843_v1 = vsel %vm366_vm3, %v2837_v63, -inf }
0x140f   :  { %2844 = vmax.xlane.f32.xlu0 %v2843_v1 }
0x141c   :  { %2940 = vrot.lane.b32.xlu1 %v5551_v39, %s5056_s11 }
0x1420   :  { %3018 = vrot.lane.b32.xlu1 %v5533_v19, %s5057_s9 }
0x1425   :  { %2863 = vrot.lane.b32.xlu0 %v5523_v14, %s5056_s11 }
0x1498   :  { %v2842_v2 = vpop.xlane.xlu1 %2841 }
0x1499   :  { %v2846_v3 = vsub.f32 %v2759_v52, %v2842_v2 }
0x149b   :  { %v2848_v4 = vmul.f32 1.442695, %v2846_v3 }
0x149c   :  { %v2941_v8 = vpop.permute.xlu1 %2940  ;;  %v2845_v36 = vpop.xlane.xlu0 %2844 }
0x149d   :  { %4893 = vpow2.f32 %v2848_v4  ;;  %v2847_v10 = vsub.f32 %v2837_v63, %v2845_v36  ;;  %4631 = vmatpush3.msra.mxu1 %v2941_v8 }
0x149e   :  { %4640 = vmatprep.subr.mxu1 %v5054_v25 }
0x149f   :  { %v2850_v11 = vmul.f32 1.442695, %v2847_v10 }
0x14a0   :  { %v2864_v12 = vpop.permute.xlu0 %2863  ;;  %v3019_v7 = vpop.permute.xlu1 %3018 }
0x14a1   :  { %4895 = vpow2.f32 %v2850_v11  ;;  %4626 = vmatpush3.msra.mxu0 %v2864_v12 }
0x14a2   :  { %4635 = vmatprep.subr.mxu0 %v5054_v25 }
0x14a7   :  { %v4894_v13 = vpop.eup %4893 }
0x14a8   :  { %v2852_v15 = vsel %vm366_vm3, %v4894_v13, 0.0 }
0x14a9   :  { %2853 = vadd.xlane.f32.xlu0 %v2852_v15 }
0x14ab   :  { %v4896_v16 = vpop.eup %4895 }
0x14ac   :  { %v2855_v17 = vsel %vm366_vm3, %v4896_v16, 0.0 }
0x14ad   :  { %2856 = vadd.xlane.f32.xlu1 %v2855_v17 }
0x14be   :  { %3016 = vrot.lane.b32.xlu1 %v5537_v20, %s5057_s9 }
0x14bf   :  { %3096 = vrot.lane.b32.xlu0 %v5540_v37, %s5057_s9 }
0x14c3   :  { %3094 = vrot.lane.b32.xlu0 %v5548_v38, %s5057_s9 }
0x1536   :  { %v2854_v21 = vpop.xlane.xlu0 %2853 }
0x1537   :  { %4897 = vrcp.f32 %v2854_v21 }
0x153a   :  { %v2857_v9 = vpop.xlane.xlu1 %2856  ;;  %v3097_v27 = vpop.permute.xlu0 %3096 }
0x153b   :  { %4899 = vrcp.f32 %v2857_v9 }
0x153e   :  { %v3017_v29 = vpop.permute.xlu1 %3016  ;;  %v3095_v30 = vpop.permute.xlu0 %3094 }
0x1541   :  { %v4898_v22 = vpop.eup %4897 }
0x1542   :  { %v2860_v23 = vmul.f32 %v4898_v22, %v4894_v13 }
0x1544   :  { %4628 = vmatmul.mubr.msk.f32.vlgmr.msra.gmra.mrb[26].mxu0 %vm366_vm3, %v2860_v23 }
0x1545   :  { %v4900_v26 = vpop.eup %4899  ;;  %4636 = vmatpush3.xpose.msk.msra.mxu0 %vm366_vm3, %v3019_v7  ;;  %4637 = vmatprep.mubr.msk.f32.mxu0 %vm5055_vm2, %v5054_v25 }
0x1546   :  { %v2861_v28 = vmul.f32 %v4900_v26, %v4896_v16  ;;  %4645 = vmatprep.subr.mxu0 %v5054_v25 }
0x1548   :  { %4633 = vmatmul.mubr.msk.f32.vlgmr.msra.gmra.mrb[36].mxu1 %vm366_vm3, %v2861_v28  ;;  %4638 = vmatmul.mubr.msk.f32.vlgmr.msra.gmra.mrb[28].mxu0 %vm366_vm3, %v3017_v29 }
0x1549   :  { %4641 = vmatpush3.xpose.msk.msra.mxu1 %vm366_vm3, %v3097_v27  ;;  %4642 = vmatprep.mubr.msk.f32.mxu1 %vm5055_vm2, %v5054_v25 }
0x154a   :  { %4650 = vmatprep.subr.mxu1 %v5054_v25  ;;  %4647 = vmatprep.mubr.msk.f32.mxu0 %vm5055_vm2, %v5054_v25 }
0x154c   :  { %4643 = vmatmul.mubr.msk.f32.vlgmr.msra.gmra.mrb[38].mxu1 %vm366_vm3, %v3095_v30 }
0x154d   :  { %4652 = vmatprep.mubr.msk.f32.mxu1 %vm5055_vm2, %v5054_v25 }
0x1617   :  { %v5633_v32 = vpop.f32.mrb[26].mxu0 }
0x1618   :  { %v4629_v33 = vpop.f32.mrb[27].mxu0 }
0x161b   :  { %v5635_v34 = vpop.f32.mrb[36].mxu1  ;;  %v3090_v41 = vpop.f32.mrb[28].mxu0 }
0x161c   :  { %v3091_v24 = vadd.f32 %v5593_v58, %v3090_v41  ;;  %v4634_v18 = vpop.f32.mrb[37].mxu1  ;;  %v4639_v35 = vpop.f32.mrb[29].mxu0 }
0x161d   :  { %v3708_v18 = vld [vmem:[#allocation7 + $0x28] sm:$0xff] }
0x161e   :  { %v3172_v45 = vsel %vm366_vm3, %v3091_v24, -inf }
0x161f   :  { %3173 = vmax.xlane.f32.xlu1 %v3172_v45  ;;  %v3168_v42 = vpop.f32.mrb[38].mxu1  ;;  %v3709_v45 = vld [vmem:[#allocation7 + $0x30] sm:$0xff] }
0x1620   :  { %v3169_v43 = vadd.f32 %v5597_v62, %v3168_v42  ;;  %v4644_v44 = vpop.f32.mrb[39].mxu1  ;;  %v3710_v42 = vld [vmem:[#allocation7 + $0x38] sm:$0xff] }
0x1622   :  { %v3175_v46 = vsel %vm366_vm3, %v3169_v43, -inf }
0x1623   :  { %3176 = vmax.xlane.f32.xlu0 %v3175_v46 }
0x1630   :  { %3270 = vrot.lane.b32.xlu1 %v5551_v39, %s5057_s9 }
0x1634   :  { %3348 = vrot.lane.b32.xlu1 %v5533_v19, %s5058_s10 }
0x1639   :  { %3194 = vrot.lane.b32.xlu0 %v5523_v14, %s5057_s9 }
0x16ac   :  { %v3174_v47 = vpop.xlane.xlu1 %3173 }
0x16ad   :  { %v3178_v48 = vsub.f32 %v3091_v24, %v3174_v47 }
0x16af   :  { %v3180_v49 = vmul.f32 1.442695, %v3178_v48 }
0x16b0   :  { %v3271_v50 = vpop.permute.xlu1 %3270  ;;  %v3177_v51 = vpop.xlane.xlu0 %3176 }
0x16b1   :  { %4901 = vpow2.f32 %v3180_v49  ;;  %v3179_v53 = vsub.f32 %v3169_v43, %v3177_v51  ;;  %4651 = vmatpush3.msra.mxu1 %v3271_v50  ;;  %v4800_v43 = vpack.c.bf16 %v3710_v42, %v3709_v45  ;;  %v4243_v42 = vld [vmem:[%s5785_s6 + $0xf] ss:$0 sm:$0xff] }
0x16b2   :  { %4660 = vmatprep.subr.mxu1 %v5054_v25 }
0x16b3   :  { %v3182_v55 = vmul.f32 1.442695, %v3179_v53 }
0x16b4   :  { %v3195_v57 = vpop.permute.xlu0 %3194  ;;  %v3349_v54 = vpop.permute.xlu1 %3348 }
0x16b5   :  { %4903 = vpow2.f32 %v3182_v55  ;;  %4646 = vmatpush3.msra.mxu0 %v3195_v57 }
0x16b6   :  { %4655 = vmatprep.subr.mxu0 %v5054_v25 }
0x16bb   :  { %v4902_v19 = vpop.eup %4901 }
0x16bc   :  { %v3184_v31 = vsel %vm366_vm3, %v4902_v19, 0.0 }
0x16bd   :  { %3185 = vadd.xlane.f32.xlu0 %v3184_v31 }
0x16bf   :  { %v4904_v52 = vpop.eup %4903 }
0x16c0   :  { %v3187_v59 = vsel %vm366_vm3, %v4904_v52, 0.0 }
0x16c1   :  { %3188 = vadd.xlane.f32.xlu1 %v3187_v59 }
0x16d2   :  { %3346 = vrot.lane.b32.xlu1 %v5537_v20, %s5058_s10 }
0x16d3   :  { %3426 = vrot.lane.b32.xlu0 %v5540_v37, %s5058_s10 }
0x16d7   :  { %3424 = vrot.lane.b32.xlu0 %v5548_v38, %s5058_s10 }
0x174a   :  { %v3186_v60 = vpop.xlane.xlu0 %3185 }
0x174b   :  { %4905 = vrcp.f32 %v3186_v60 }
0x174e   :  { %v3189_v61 = vpop.xlane.xlu1 %3188  ;;  %v3427_v2 = vpop.permute.xlu0 %3426 }
0x174f   :  { %4907 = vrcp.f32 %v3189_v61 }
0x1752   :  { %v3347_v37 = vpop.permute.xlu1 %3346  ;;  %v3425_v38 = vpop.permute.xlu0 %3424 }
0x1755   :  { %v4906_v63 = vpop.eup %4905 }
0x1756   :  { %v3192_v0 = vmul.f32 %v4906_v63, %v4902_v19 }
0x1758   :  { %4648 = vmatmul.mubr.msk.f32.vlgmr.msra.gmra.mrb[30].mxu0 %vm366_vm3, %v3192_v0 }
0x1759   :  { %v4908_v1 = vpop.eup %4907  ;;  %4656 = vmatpush3.xpose.msk.msra.mxu0 %vm366_vm3, %v3349_v54  ;;  %4657 = vmatprep.mubr.msk.f32.mxu0 %vm5055_vm2, %v5054_v25 }
0x175a   :  { %v3193_v20 = vmul.f32 %v4908_v1, %v4904_v52  ;;  %4665 = vmatprep.subr.mxu0 %v5054_v25 }
0x175c   :  { %4653 = vmatmul.mubr.msk.f32.vlgmr.msra.gmra.mrb[40].mxu1 %vm366_vm3, %v3193_v20  ;;  %4658 = vmatmul.mubr.msk.f32.vlgmr.msra.gmra.mrb[32].mxu0 %vm366_vm3, %v3347_v37 }
0x175d   :  { %4661 = vmatpush3.xpose.msk.msra.mxu1 %vm366_vm3, %v3427_v2  ;;  %4662 = vmatprep.mubr.msk.f32.mxu1 %vm5055_vm2, %v5054_v25 }
0x175e   :  { %4670 = vmatprep.subr.mxu1 %v5054_v25  ;;  %4667 = vmatprep.mubr.msk.f32.mxu0 %vm5055_vm2, %v5054_v25 }
0x1760   :  { %4663 = vmatmul.mubr.msk.f32.vlgmr.msra.gmra.mrb[42].mxu1 %vm366_vm3, %v3425_v38 }
0x1761   :  { %4672 = vmatprep.mubr.msk.f32.mxu1 %vm5055_vm2, %v5054_v25 }
0x182b   :  { %v3266_v3 = vpop.f32.mrb[30].mxu0 }
0x182c   :  { %v4649_v4 = vpop.f32.mrb[31].mxu0 }
0x182f   :  { %v3342_v8 = vpop.f32.mrb[40].mxu1  ;;  %v3420_v36 = vpop.f32.mrb[32].mxu0 }
0x1830   :  { %v3421_v10 = vadd.f32 %v5593_v58, %v3420_v36  ;;  %v4654_v11 = vpop.f32.mrb[41].mxu1  ;;  %v4659_v12 = vpop.f32.mrb[33].mxu0 }
0x1832   :  { %v3502_v13 = vsel %vm366_vm3, %v3421_v10, -inf }
0x1833   :  { %3503 = vmax.xlane.f32.xlu1 %v3502_v13  ;;  %v3498_v15 = vpop.f32.mrb[42].mxu1 }
0x1834   :  { %v3499_v16 = vadd.f32 %v5597_v62, %v3498_v15  ;;  %v4664_v17 = vpop.f32.mrb[43].mxu1  ;;  %v3850_v15 = vld [vmem:[#allocation8 + $0x28] sm:$0xff] }
0x1835   :  { %v3851_v17 = vld [vmem:[#allocation8 + $0x30] sm:$0xff] }
0x1836   :  { %v3505_v7 = vsel %vm366_vm3, %v3499_v16, -inf }
0x1837   :  { %3506 = vmax.xlane.f32.xlu0 %v3505_v7  ;;  %v3852_v7 = vld [vmem:[#allocation8 + $0x38] sm:$0xff] }
0x18c0   :  { %v3504_v21 = vpop.xlane.xlu1 %3503 }
0x18c1   :  { %v3508_v25 = vsub.f32 %v3421_v10, %v3504_v21  ;;  %v4808_v21 = vpack.c.bf16 %v3852_v7, %v3851_v17  ;;  %v4261_v17 = vld [vmem:[%s5785_s6 + $0x12] ss:$0 sm:$0xff] }
0x18c3   :  { %v3510_v9 = vmul.f32 1.442695, %v3508_v25  ;;  %v4248_v25 = vld [vmem:[%s5784_s5 + $0x40] sm:$0xff] }
0x18c4   :  { %v3507_v22 = vpop.xlane.xlu0 %3506 }
0x18c5   :  { %4909 = vpow2.f32 %v3510_v9  ;;  %v3509_v23 = vsub.f32 %v3499_v16, %v3507_v22  ;;  %v4249_v9 = vld [vmem:[%s5784_s5 + $0x48] sm:$0xff]  ;;  %v4250_v22 = vld [vmem:[%s5784_s5 + $0x50] sm:$0xff] }
0x18c7   :  { %v3512_v26 = vmul.f32 1.442695, %v3509_v23  ;;  %v4812_v23 = vpack.c.bf16 %v4249_v9, %v4248_v25  ;;  %v4263_v9 = vld [vmem:[%s5785_s6 + $0x13] ss:$0 sm:$0xff] }
0x18c9   :  { %4911 = vpow2.f32 %v3512_v26  ;;  %v4251_v26 = vld [vmem:[%s5784_s5 + $0x58] sm:$0xff] }
0x18cf   :  { %v4910_v58 = vpop.eup %4909 }
0x18d0   :  { %v3514_v27 = vsel %vm366_vm3, %v4910_v58, 0.0 }
0x18d1   :  { %3515 = vadd.xlane.f32.xlu0 %v3514_v27  ;;  %v4252_v27 = vld [vmem:[%s5784_s5 + $0x60] sm:$0xff] }
0x18d3   :  { %v4912_v28 = vpop.eup %4911 }
0x18d4   :  { %v3517_v29 = vsel %vm366_vm3, %v4912_v28, 0.0 }
0x18d5   :  { %3518 = vadd.xlane.f32.xlu1 %v3517_v29 }
0x18e6   :  { %3600 = vrot.lane.b32.xlu1 %v5551_v39, %s5058_s10 }
0x18e7   :  { %3524 = vrot.lane.b32.xlu0 %v5523_v14, %s5058_s10 }
0x18ea   :  { %3678 = vrot.lane.b32.xlu1 %v5633_v32, %s5047_s12 }
0x18eb   :  { %3680 = vrot.lane.b32.xlu0 %v5635_v34, %s5047_s12  ;;  %v3707_v34 = vld [vmem:[#allocation7 + $0x20] sm:$0xff] }
0x18ec   :  { %v4796_v35 = vpack.c.bf16 %v3708_v18, %v3707_v34 }
0x18ee   :  { %3686 = vrot.lane.b32.xlu1 %v3266_v3, %s5059_s13 }
0x18ef   :  { %3688 = vrot.lane.b32.xlu0 %v3342_v8, %s5059_s13  ;;  %s5061_s13 = smov [#allocation10]  }
0x195e   :  { %v3516_v62 = vpop.xlane.xlu0 %3515 }
0x195f   :  { %4913 = vrcp.f32 %v3516_v62 }
0x1962   :  { %v3519_v30 = vpop.xlane.xlu1 %3518  ;;  %v3525_v33 = vpop.permute.xlu0 %3524 }
0x1963   :  { %4915 = vrcp.f32 %v3519_v30  ;;  %4666 = vmatpush3.msra.mxu0 %v3525_v33 }
0x1964   :  { %4797 = vmatprep.subr.bf16.mxu0 %v4796_v35 }
0x1966   :  { %v3601_v39 = vpop.permute.xlu1 %3600  ;;  %v3681_v50 = vpop.permute.xlu0 %3680 }
0x1967   :  { %4671 = vmatpush3.msra.mxu1 %v3601_v39  ;;  %v3701_v52 = vsel %vm366_vm3, %v5591_v40, %v3681_v50  ;;  %v4245_v50 = vld [vmem:[%s5785_s6 + $0x10] ss:$0 sm:$0xff] }
0x1969   :  { %v4914_v41 = vpop.eup %4913 }
0x196a   :  { %v3522_v14 = vmul.f32 %v4914_v41, %v4910_v58  ;;  %v3679_v49 = vpop.permute.xlu1 %3678  ;;  %v3689_v55 = vpop.permute.xlu0 %3688  ;;  %v4816_v58 = vpack.c.bf16 %v4251_v26, %v4250_v22 }
0x196b   :  { %v3700_v53 = vsel %vm366_vm3, %v5589_v56, %v3679_v49  ;;  %v3703_v59 = vsel %vm1705_vm5, %v3701_v52, %v3689_v55  ;;  %v4237_v56 = vld [vmem:[%s5785_s6 + $0xd] ss:$0 sm:$0xff]  ;;  %v4257_v52 = vld [vmem:[%s5785_s6 + $0x11] ss:$0 sm:$0xff] }
0x196c   :  { %4668 = vmatmul.mubr.msk.f32.vlgmr.msra.gmra.mrb[34].mxu0 %vm366_vm3, %v3522_v14 }
0x196d   :  { %v4916_v32 = vpop.eup %4915  ;;  %4799 = vmatpush3.bf16.msra.mxu0 %v4796_v35 }
0x196e   :  { %v3523_v24 = vmul.f32 %v4916_v32, %v4912_v28  ;;  %4801 = vmatprep.subr.bf16.mxu0 %v4800_v43  ;;  %v3687_v51 = vpop.permute.xlu1 %3686  ;;  %v4253_v28 = vld [vmem:[%s5784_s5 + $0x68] sm:$0xff] }
0x196f   :  { %v3702_v57 = vsel %vm1705_vm5, %v3700_v53, %v3687_v51  ;;  %v4820_v29 = vpack.c.bf16 %v4253_v28, %v4252_v27 }
0x1970   :  { %4673 = vmatmul.mubr.msk.f32.vlgmr.msra.gmra.mrb[44].mxu1 %vm366_vm3, %v3523_v24  ;;  %v4241_v24 = vld [vmem:[%s5785_s6 + $0xe] ss:$0 sm:$0xff] }
0x1971   :  { %4803 = vmatpush3.bf16.msra.mxu0 %v4800_v43 }
0x1972   :  { %4813 = vmatprep.subr.bf16.mxu0 %v4812_v23 }
0x1a3f   :  { %v3596_v44 = vpop.f32.mrb[34].mxu0 }
0x1a40   :  { %3694 = vrot.lane.b32.xlu1 %v3596_v44, %s5060_s14  ;;  %v4669_v46 = vpop.f32.mrb[35].mxu0 }
0x1a43   :  { %v3672_v47 = vpop.f32.mrb[44].mxu1 }
0x1a44   :  { %3696 = vrot.lane.b32.xlu0 %v3672_v47, %s5060_s14  ;;  %v4674_v48 = vpop.f32.mrb[45].mxu1  ;;  %v4254_v47 = vld [vmem:[%s5784_s5 + $0x70] sm:$0xff]  ;;  %s4114_s14 = sshll.u32 %s5061_s13, 4  ;;  %s4115_s14 = int_to_ptr.vmem [resolvable:$true] %s4114_s14 }
0x1a45   :  { %v4255_v48 = vld [vmem:[%s5784_s5 + $0x78] sm:$0xff]  ;;  %s5015_s6 = scalar_lea.vmem %s4115_s14, 64  ;;  %p5020_p5 = scmp.lt.s32.totalorder %s4115_s14, %s4115_s14 }
0x1a46   :  { %v4824_v49 = vpack.c.bf16 %v4255_v48, %v4254_v47  ;;  %p5016_p4 = scmp.ne.s32.totalorder %s4115_s14, %s5015_s6  ;;  %p5021_p6 = scmp.lt.s32.totalorder %s5015_s6, %s5015_s6 }
0x1a48   :  { %p5022_p7 = por %p5021_p6, %p5020_p5 }
0x1a4a   :  { %p5023_p8 = pnand %p5022_p7, %p5016_p4 }
0x1ab2   :  { %v3695_v19 = vpop.permute.xlu1 %3694 }
0x1ab3   :  { %v3704_v31 = vsel %vm1708_vm4, %v3702_v57, %v3695_v19 }
0x1ab4   :  { %4683 = vmatprep.mubr.msk.f32.mxu0 %vm108_vm1, %v3704_v31 }
0x1ab6   :  { %v3697_v54 = vpop.permute.xlu0 %3696 }
0x1ab7   :  { %v3705_v60 = vsel %vm1708_vm4, %v3703_v59, %v3697_v54 }
0x1ab8   :  { %4684 = vmatmul.mubr.msk.f32.vlgmr.msra.gmra.mrb[36].mxu0 %vm108_vm1, %v3705_v60 }
0x1ab9   :  { %4815 = vmatpush3.bf16.msra.mxu0 %v4812_v23 }
0x1aba   :  { %4817 = vmatprep.subr.bf16.mxu0 %v4816_v58 }
0x1abd   :  { %4819 = vmatpush3.bf16.msra.mxu0 %v4816_v58 }
0x1abe   :  { %4821 = vmatprep.subr.bf16.mxu0 %v4820_v29 }
0x1ac1   :  { %4823 = vmatpush3.bf16.msra.mxu0 %v4820_v29 }
0x1ac2   :  { %4825 = vmatprep.subr.bf16.mxu0 %v4824_v49 }
0x1ac5   :  { %4827 = vmatpush3.bf16.msra.mxu0 %v4824_v49 }
0x1b8b   :  { %v4685_v61 = vpop.f32.mrb[36].mxu0 }
0x1b8c   :  { %v3797_v63 = vadd.f32 %v4685_v61, %v4237_v56  ;;  %v3791_v0 = vpop.f32.mrb[37].mxu0 }
0x1b8d   :  { %v3792_v1 = vadd.f32 %v4237_v56, %v3791_v0 }
0x1b8e   :  { %v3801_v2 = vadd.f32 %v3797_v63, %v5501_v6 }
0x1b8f   :  { %v3800_v20 = vadd.f32 %v3792_v1, %v5499_v5  ;;  %v3849_v5 = vld [vmem:[#allocation8 + $0x20] sm:$0xff] }
0x1b90   :  { %v3805_v40 = vsel %vm108_vm1, %v3801_v2, 0.0  ;;  %v4804_v16 = vpack.c.bf16 %v3850_v15, %v3849_v5 }
0x1b91   :  { %3806 = vadd.xlane.f32.xlu0 %v3805_v40  ;;  %v3802_v37 = vsel %vm108_vm1, %v3800_v20, 0.0 }
0x1b92   :  { %3803 = vadd.xlane.f32.xlu1 %v3802_v37  ;;  %4805 = vmatprep.subr.bf16.mxu1 %v4804_v16 }
0x1b93   :  { %4807 = vmatpush3.bf16.msra.mxu1 %v4804_v16 }
0x1b94   :  { %4809 = vmatprep.subr.bf16.mxu1 %v4808_v21 }
0x1b97   :  { %4811 = vmatpush3.bf16.msra.mxu1 %v4808_v21 }
0x1c1e   :  { %v3807_v38 = vpop.xlane.xlu0 %3806 }
0x1c1f   :  { %v3809_v3 = vmul.f32 0.03125, %v3807_v38  ;;  %v3804_v4 = vpop.xlane.xlu1 %3803 }
0x1c20   :  { %v3808_v8 = vmul.f32 0.03125, %v3804_v4 }
0x1c21   :  { %v3811_v36 = vsub.f32 %v3801_v2, %v3809_v3 }
0x1c22   :  { %v3810_v10 = vsub.f32 %v3800_v20, %v3808_v8 }
0x1c23   :  { %v3813_v11 = vmul.f32 %v3811_v36, %v3811_v36 }
0x1c24   :  { %v3812_v12 = vmul.f32 %v3810_v10, %v3810_v10 }
0x1c25   :  { %v3817_v13 = vsel %vm108_vm1, %v3813_v11, 0.0 }
0x1c26   :  { %3818 = vadd.xlane.f32.xlu1 %v3817_v13  ;;  %v3814_v6 = vsel %vm108_vm1, %v3812_v12, 0.0 }
0x1c27   :  { %3815 = vadd.xlane.f32.xlu0 %v3814_v6 }
0x1cb3   :  { %v3819_v62 = vpop.xlane.xlu1 %3818 }
0x1cb4   :  { %v3821_v30 = vmul.f32 0.03125, %v3819_v62  ;;  %v3816_v33 = vpop.xlane.xlu0 %3815 }
0x1cb5   :  { %v3820_v39 = vmul.f32 0.03125, %v3816_v33 }
0x1cb6   :  { %v3823_v41 = vadd.f32 1e-05, %v3821_v30 }
0x1cb7   :  { %v3822_v14 = vadd.f32 1e-05, %v3820_v39 }
0x1cb8   :  { %4917 = vrsqrt.f32 %v3823_v41 }
0x1cb9   :  { %4919 = vrsqrt.f32 %v3822_v14 }
0x1cc2   :  { %v4918_v32 = vpop.eup %4917 }
0x1cc3   :  { %v4920_v34 = vpop.eup %4919  ;;  %v3827_v18 = vmul.f32 %v4918_v32, %v3811_v36 }
0x1cc4   :  { %v3826_v35 = vmul.f32 %v4920_v34, %v3810_v10 }
0x1cc5   :  { %v3837_v45 = vmul.f32 %v4241_v24, %v3827_v18 }
0x1cc6   :  { %v3836_v43 = vmul.f32 %v4241_v24, %v3826_v35 }
0x1cc7   :  { %v3847_v46 = vadd.f32 %v4243_v42, %v3837_v45 }
0x1cc8   :  { %v3846_v44 = vadd.f32 %v4243_v42, %v3836_v43 }
0x1cca   :  { %4694 = vmatprep.mubr.msk.f32.mxu1 %vm108_vm1, %v3846_v44 }
0x1ccb   :  { %4695 = vmatmul.mubr.msk.f32.vlgmr.msra.gmra.mrb[46].mxu1 %vm108_vm1, %v3847_v46 }
0x1d9e   :  { %v4696_v51 = vpop.f32.mrb[46].mxu1 }
0x1d9f   :  { %v3939_v53 = vadd.f32 %v4696_v51, %v4245_v50  ;;  %v3933_v55 = vpop.f32.mrb[47].mxu1 }
0x1da0   :  { %v3934_v57 = vadd.f32 %v4245_v50, %v3933_v55 }
0x1da1   :  { %v3943_v31 = vmax.f32 %v3939_v53, 0.0 }
0x1da2   :  { %v3942_v19 = vmax.f32 %v3934_v57, 0.0 }
0x1da4   :  { %4713 = vmatprep.mubr.msk.f32.mxu0 %vm1964_vm6, %v3942_v19 }
0x1da5   :  { %4714 = vmatmul.mubr.msk.f32.vlgmr.msra.gmra.mrb[38].mxu0 %vm1964_vm6, %v3943_v31 }
0x1e78   :  { %v4715_v59 = vpop.f32.mrb[38].mxu0 }
0x1e79   :  { %v4039_v54 = vadd.f32 %v4715_v59, %v4257_v52  ;;  %v4033_v60 = vpop.f32.mrb[39].mxu0 }
0x1e7a   :  { %v4034_v56 = vadd.f32 %v4257_v52, %v4033_v60 }
0x1e7b   :  { %v4043_v61 = vadd.f32 %v4039_v54, %v3847_v46 }
0x1e7c   :  { %v4042_v63 = vadd.f32 %v4034_v56, %v3846_v44 }
0x1e7d   :  { %v4047_v0 = vsel %vm108_vm1, %v4043_v61, 0.0 }
0x1e7e   :  { %4048 = vadd.xlane.f32.xlu1 %v4047_v0  ;;  %v4044_v1 = vsel %vm108_vm1, %v4042_v63, 0.0 }
0x1e7f   :  { %4045 = vadd.xlane.f32.xlu0 %v4044_v1 }
0x1f0b   :  { %v4049_v2 = vpop.xlane.xlu1 %4048 }
0x1f0c   :  { %v4051_v20 = vmul.f32 0.03125, %v4049_v2  ;;  %v4046_v40 = vpop.xlane.xlu0 %4045 }
0x1f0d   :  { %v4050_v37 = vmul.f32 0.03125, %v4046_v40 }
0x1f0e   :  { %v4053_v38 = vsub.f32 %v4043_v61, %v4051_v20 }
0x1f0f   :  { %v4052_v3 = vsub.f32 %v4042_v63, %v4050_v37 }
0x1f10   :  { %v4055_v4 = vmul.f32 %v4053_v38, %v4053_v38 }
0x1f11   :  { %v4054_v8 = vmul.f32 %v4052_v3, %v4052_v3 }
0x1f12   :  { %v4059_v36 = vsel %vm108_vm1, %v4055_v4, 0.0 }
0x1f13   :  { %4060 = vadd.xlane.f32.xlu1 %v4059_v36  ;;  %v4056_v10 = vsel %vm108_vm1, %v4054_v8, 0.0 }
0x1f14   :  { %4057 = vadd.xlane.f32.xlu0 %v4056_v10 }
0x1fa0   :  { %v4061_v11 = vpop.xlane.xlu1 %4060 }
0x1fa1   :  { %v4063_v12 = vmul.f32 0.03125, %v4061_v11  ;;  %v4058_v13 = vpop.xlane.xlu0 %4057 }
0x1fa2   :  { %v4062_v6 = vmul.f32 0.03125, %v4058_v13 }
0x1fa3   :  { %v4065_v5 = vadd.f32 1e-05, %v4063_v12 }
0x1fa4   :  { %v4064_v15 = vadd.f32 1e-05, %v4062_v6 }
0x1fa5   :  { %4921 = vrsqrt.f32 %v4065_v5 }
0x1fa6   :  { %4923 = vrsqrt.f32 %v4064_v15 }
0x1faf   :  { %v4922_v16 = vpop.eup %4921 }
0x1fb0   :  { %v4924_v7 = vpop.eup %4923  ;;  %v4069_v21 = vmul.f32 %v4922_v16, %v4053_v38 }
0x1fb1   :  { %v4068_v25 = vmul.f32 %v4924_v7, %v4052_v3 }
0x1fb2   :  { %v4079_v22 = vmul.f32 %v4261_v17, %v4069_v21 }
0x1fb3   :  { %v4078_v23 = vmul.f32 %v4261_v17, %v4068_v25 }
0x1fb4   :  { %v4089_v26 = vadd.f32 %v4263_v9, %v4079_v22 }
0x1fb5   :  { %v4088_v58 = vadd.f32 %v4263_v9, %v4078_v23 }
0x1fb6   :  { %4096 = vrot.lane.b32.xlu1 %v4089_v26, %s5053_s26  ;;  %v4099_v28 = vrot.slane %v4089_v26, 4 }
0x1fb7   :  { %v4091_v27 = vrot.slane %v4088_v58, 4 }
0x1fb9   :  { %4092 = vrot.lane.b32.xlu0 %v4091_v27, %s5052_s20 }
0x1fba   :  { %4100 = vrot.lane.b32.xlu1 %v4099_v28, %s5051_s19 }
0x2028   :  { %v4097_v29 = vpop.permute.xlu1 %4096 }
0x202b   :  { %v4093_v62 = vpop.permute.xlu0 %4092 }
0x202c   :  { %v4103_v30 = vsel %vm108_vm1, %v4088_v58, %v4093_v62  ;;  %v4101_v33 = vpop.permute.xlu1 %4100 }
0x202d   :  { %v4104_v39 = vsel %vm1964_vm6, %v4103_v30, %v4097_v29 }
0x202e   :  { %v4106_v41 = vsel %vm4105_vm7, %v4104_v39, %v4101_v33 }
0x202f   :  { %4107 = vst [vmem:[#allocation10] sm:$0xf] %v4106_v41 }
0x2030   :  { %5026 = shalt.err (!%p5023_p8)
}
0x2031   :  { %s5027_s26 = scalar_lea.hbm %s5786_s7, 64 }
0x2032   :  { %p5028_p9 = scmp.ne.s32.totalorder %s5786_s7, %s5027_s26  ;;  %p5031_p10 = scmp.lt.u32.totalorder %s5027_s26, %s5786_s7 }
0x2034   :  { %p5033_p11 = pnand %p5031_p10, %p5028_p9 }
0x2036   :  { %5036 = shalt.err (!%p5033_p11)
}
0x2037   :  { %4117 = dma.vmem_to_hbm [thread:$0]  %s4115_s14, 64, %s5786_s7, [#allocation4]  }
0x2038   :  { %5043 = dma.done.wait [#allocation4], 64  }
0x2039   :  { %5044 = vsyncadd [#allocation4], 4294967232 }
0x203a   :  { %4121 = vsyncpa [#allocation3], 1 }
0x203b   :  { %4122 = vsyncpa [#allocation6], 1 }
0x203c   :  { %4123 = vsyncpa [#allocation9], 1 }
0x203d   :  { %4124 = vsyncpa [#allocation4], 1 }

</bundles_post_ra>
